<compile_context>
chip_gen: v5e
topology: v5e:2x2
jax: 0.10.0
libtpu: 0.0.40
codegen_flags: <defaults>
</compile_context>

<pallas_src>
import jax
import jax.numpy as jnp
from jax import lax
from jax.experimental import pallas as pl
from jax.experimental.pallas import tpu as pltpu


def mf_kernel(idx_ref, tab_t_ref, out_ref):
    # idx_ref:   (1, 2*TB) int32  -- [user ids | item ids + num_users] for this tile
    # tab_t_ref: (F, K_pad) bf16  -- fused [user; item] table, transposed
    # out_ref:   (1, TB)    f32   -- lane-dense per-tile result row
    tb = out_ref.shape[1]
    k_pad = tab_t_ref.shape[1]

    ids = idx_ref[...]                                          # (1, 2*tb)
    rows = lax.broadcasted_iota(jnp.int32, (k_pad, 2 * tb), 0)  # (k_pad, 2*tb)
    # Build the one-hot directly in the table dtype (bf16): halves the
    # cast/store vreg traffic vs f32 and feeds the MXU at its native rate.
    onehot_t = (rows == ids).astype(tab_t_ref.dtype)            # (k_pad, 2*tb)

    # Single fused gather on the MXU: (F, K_pad) @ (K_pad, 2*tb) -> (F, 2*tb)
    # f32 accumulate; exactly one nonzero per column -> no accumulation error.
    emb_t = jnp.dot(tab_t_ref[...], onehot_t,
                    preferred_element_type=jnp.float32)

    prod = emb_t[:, :tb] * emb_t[:, tb:]                        # (F, tb) f32
    # Cross-sublane (XLU) reduce over the factor dim -> lane-dense (1, tb).
    out_ref[...] = jnp.sum(prod, axis=0, keepdims=True)


def _vmem_limit_bytes():
    """Per-generation scoped-VMEM budget with headroom for compiler scratch."""
    cap = 128 * 1024 * 1024
    try:
        info = pltpu.get_tpu_info()
        cap = int(getattr(info, "vmem_capacity_bytes", cap) or cap)
    except Exception:
        pass
    # v5e/v6e (128 MiB physical) -> 64 MiB scoped; v7x (64 MiB) -> 32 MiB.
    return int(min(64 * 1024 * 1024, max(32 * 1024 * 1024, cap // 2)))


def _clamp_tile(tb, F, K_pad, tab_itemsize, vmem_limit):
    """Shrink tb (by powers of 2, >=128) until the per-tile estimate fits."""
    def est(t):
        table = 2 * F * K_pad * tab_itemsize            # worst case: 2 buffers
        onehot = K_pad * 2 * t * tab_itemsize           # bf16 one-hot
        result = F * 2 * t * 4                          # f32 matmul result
        io = 2 * (2 * t * 4 + t * 4)                    # idx/out double buffers
        return table + onehot + result + io
    while tb > 128 and est(tb) > 0.7 * vmem_limit:
        tb //= 2
    return tb


def mf_prepare_tables(user_table, item_table, *, dtype=jnp.bfloat16):
    """One-time table prep: stack users+items, pad rows to a 256 multiple,
    transpose to (F, K_pad), cast to bf16.  Call once, reuse across forwards."""
    U, F = user_table.shape
    I, F2 = item_table.shape
    assert F == F2, "user/item factor dims must match"
    K = U + I
    # 256-multiple keeps the v6e/v7x 256-wide MXU contraction dim full
    # (harmless on v5e's 128x128 MXU).
    K_pad = ((max(K, 256) + 255) // 256) * 256
    stacked = jnp.concatenate([user_table, item_table], axis=0)   # (K, F)
    stacked = jnp.pad(stacked, ((0, K_pad - K), (0, 0)))          # (K_pad, F)
    tab_t = jnp.transpose(stacked).astype(dtype)                  # (F, K_pad)
    return tab_t, U


def mf_forward(x_idx, tab_t, num_users, *, tb=512):
    """x_idx: (B, 2) integer [user_id, item_id]; tab_t/num_users from
    mf_prepare_tables().  Returns (B,) float32."""
    B = x_idx.shape[0]
    F, K_pad = tab_t.shape

    vmem_limit = _vmem_limit_bytes()
    tb = _clamp_tile(tb, F, K_pad, tab_t.dtype.itemsize, vmem_limit)

    # ---- per-call index plumbing (cheap, O(B)) ----
    # Pad batch to a tile multiple, pre-offset item ids by num_users, lay each
    # tile out as one lane-dense row [u_0..u_{tb-1} | i_0..i_{tb-1}].
    n_tiles = -(-B // tb)
    B_pad = n_tiles * tb
    u = jnp.pad(x_idx[:, 0].astype(jnp.int32), (0, B_pad - B))
    i = jnp.pad(x_idx[:, 1].astype(jnp.int32) + num_users, (0, B_pad - B))
    idx = jnp.stack([u, i], axis=0)                               # (2, B_pad)
    idx = (idx.reshape(2, n_tiles, tb)
              .transpose(1, 0, 2)
              .reshape(1, 2 * B_pad))                             # (1, 2*B_pad)

    def run(single_buffer_table):
        if single_buffer_table:
            # Constant index_map: the table is never re-DMA'd, so one buffer
            # suffices and halves the largest resident VMEM allocation.
            tab_spec = pl.BlockSpec((F, K_pad), lambda b: (0, 0),
                                    pipeline_mode=pl.Buffered(buffer_count=1))
        else:
            tab_spec = pl.BlockSpec((F, K_pad), lambda b: (0, 0))
        return pl.pallas_call(
            mf_kernel,
            out_shape=jax.ShapeDtypeStruct((1, B_pad), jnp.float32),
            grid_spec=pltpu.PrefetchScalarGridSpec(
                num_scalar_prefetch=0,
                grid=(n_tiles,),
                in_specs=[
                    pl.BlockSpec((1, 2 * tb), lambda b: (0, b)),  # lane-dense ids
                    tab_spec,                                     # resident table
                ],
                out_specs=pl.BlockSpec((1, tb), lambda b: (0, b)),  # lane-dense out
            ),
            compiler_params=pltpu.CompilerParams(
                dimension_semantics=("parallel",),
                vmem_limit_bytes=vmem_limit,
            ),
        )(idx, tab_t)

    try:
        out = run(single_buffer_table=True)
    except Exception:
        # Fallback if this jax build rejects buffer_count=1 for a pipelined
        # input: identical semantics, just default double-buffering.
        out = run(single_buffer_table=False)

    return out[0, :B]


if __name__ == "__main__":
    # Module config: feature_dims = (num_users, num_items), n_factors = 128.
    num_users, num_items = 100, 75
    n_factors = 128
    batch = 500          # not a multiple of tb: exercises padding + 2 grid tiles

    key = jax.random.PRNGKey(0)
    k_u, k_i, k_uid, k_iid = jax.random.split(key, 4)

    # Deterministic parameter init (≈ nn.Embedding default N(0, 1))
    user_table = jax.random.normal(k_u, (num_users, n_factors), dtype=jnp.float32)
    item_table = jax.random.normal(k_i, (num_items, n_factors), dtype=jnp.float32)

    # Input: (B, 2) integer [user_id, item_id]
    uid = jax.random.randint(k_uid, (batch, 1), 0, num_users, dtype=jnp.int32)
    iid = jax.random.randint(k_iid, (batch, 1), 0, num_items, dtype=jnp.int32)
    x = jnp.concatenate([uid, iid], axis=1)

    # Table prep done ONCE (hoisted out of the per-call path).
    tab_t, U = mf_prepare_tables(user_table, item_table)

    # tb=256 in the small demo so the grid still has >= 2 tiles; production
    # default is tb=512.
    out = mf_forward(x, tab_t, U, tb=256)
    out = jax.block_until_ready(out)

    # Reference: same bf16-rounded tables, f32 math (kernel accumulates in f32,
    # so the only differences are sum-order level, ~1e-6 relative).
    ut_r = user_table.astype(jnp.bfloat16).astype(jnp.float32)
    it_r = item_table.astype(jnp.bfloat16).astype(jnp.float32)
    ref = jnp.sum(ut_r[x[:, 0]] * it_r[x[:, 1]], axis=1)

    assert out.shape == (batch,)
    assert jnp.allclose(out, ref, rtol=1e-3, atol=1e-3), float(
        jnp.max(jnp.abs(out - ref)))

    print("KERNEL_OK")
</pallas_src>

<mosaic_0001>
module attributes {stable_mosaic.version = 11 : i64} {
  func.func @mf_kernel(%arg0: i32, %arg1: memref<1x512xi32, #tpu.memory_space<vmem>>, %arg2: memref<128x256xbf16, #tpu.memory_space<vmem>>, %arg3: memref<1x256xf32, #tpu.memory_space<vmem>>) attributes {dimension_semantics = [#tpu.dimension_semantics<parallel>], iteration_bounds = array<i64: 2>, scalar_prefetch = 0 : i64, scratch_operands = 0 : i64, tpu.core_type = #tpu.core_type<tc>, window_params = [{transform_indices = @transform_0, window_bounds = array<i64: 1, 512>}, {pipeline_mode = #tpu.pipeline_mode<synchronous>, transform_indices = @transform_1, window_bounds = array<i64: 128, 256>}, {transform_indices = @transform_2, window_bounds = array<i64: 1, 256>}]} {
    %c0 = arith.constant 0 : index
    %c0_0 = arith.constant 0 : index
    %0 = vector.load %arg1[%c0, %c0_0] : memref<1x512xi32, #tpu.memory_space<vmem>>, vector<1x512xi32>
    %1 = tpu.iota {dimensions = array<i32: 0>} : vector<256x512xi32>
    %2 = vector.broadcast %0 : vector<1x512xi32> to vector<256x512xi32>
    %3 = arith.cmpi eq, %1, %2 : vector<256x512xi32>
    %4 = arith.extui %3 : vector<256x512xi1> to vector<256x512xi32>
    %5 = arith.sitofp %4 : vector<256x512xi32> to vector<256x512xf32>
    %6 = arith.truncf %5 : vector<256x512xf32> to vector<256x512xbf16>
    %c0_1 = arith.constant 0 : index
    %c0_2 = arith.constant 0 : index
    %7 = vector.load %arg2[%c0_1, %c0_2] : memref<128x256xbf16, #tpu.memory_space<vmem>>, vector<128x256xbf16>
    %cst = arith.constant dense<0.000000e+00> : vector<128x512xf32>
    %8 = tpu.matmul %7, %6, %cst {dimension_numbers = #tpu.dot_dimension_numbers<[1], [0], [0], [1], [0, 0, 1, 1], [], []>} : vector<128x256xbf16>, vector<256x512xbf16>, vector<128x512xf32> -> vector<128x512xf32>
    %9 = vector.extract_strided_slice %8 {offsets = [0, 0], sizes = [128, 256], strides = [1, 1]} : vector<128x512xf32> to vector<128x256xf32>
    %10 = vector.extract_strided_slice %8 {offsets = [0, 256], sizes = [128, 256], strides = [1, 1]} : vector<128x512xf32> to vector<128x256xf32>
    %11 = arith.mulf %9, %10 : vector<128x256xf32>
    %cst_3 = arith.constant dense<0.000000e+00> : vector<256xf32>
    %12 = vector.multi_reduction <add>, %11, %cst_3 [0] : vector<128x256xf32> to vector<256xf32>
    %13 = vector.shape_cast %12 : vector<256xf32> to vector<1x256xf32>
    %c0_4 = arith.constant 0 : index
    %c0_5 = arith.constant 0 : index
    %14 = vector.load %arg3[%c0_4, %c0_5] : memref<1x256xf32, #tpu.memory_space<vmem>>, vector<1x256xf32>
    tpu.vector_store %arg3[%c0_4, %c0_5], %13 {strides = array<i32>} : memref<1x256xf32, #tpu.memory_space<vmem>>, vector<1x256xf32>,
    return
  }
  func.func @transform_0(%arg0: i32) -> (i32, i32) {
    %c0_i32 = arith.constant 0 : i32
    %c0_i32_0 = arith.constant 0 : i32
    return %c0_i32, %arg0 : i32, i32
  }
  func.func @transform_1(%arg0: i32) -> (i32, i32) {
    %c0_i32 = arith.constant 0 : i32
    %c0_i32_0 = arith.constant 0 : i32
    %c0_i32_1 = arith.constant 0 : i32
    return %c0_i32, %c0_i32_0 : i32, i32
  }
  func.func @transform_2(%arg0: i32) -> (i32, i32) {
    %c0_i32 = arith.constant 0 : i32
    %c0_i32_0 = arith.constant 0 : i32
    return %c0_i32, %arg0 : i32, i32
  }
}

module attributes {stable_mosaic.version = 11 : i64} {
  func.func @mf_kernel(%arg0: i32, %arg1: memref<1x512xi32, #tpu.memory_space<vmem>>, %arg2: memref<128x256xbf16, #tpu.memory_space<vmem>>, %arg3: memref<1x256xf32, #tpu.memory_space<vmem>>) attributes {dimension_semantics = [#tpu.dimension_semantics<parallel>], iteration_bounds = array<i64: 2>, scalar_prefetch = 0 : i64, scratch_operands = 0 : i64, tpu.core_type = #tpu.core_type<tc>, window_params = [{transform_indices = @transform_0, window_bounds = array<i64: 1, 512>}, {pipeline_mode = #tpu.pipeline_mode<synchronous>, transform_indices = @transform_1, window_bounds = array<i64: 128, 256>}, {transform_indices = @transform_2, window_bounds = array<i64: 1, 256>}]} {
    %c0 = arith.constant 0 : index
    %c0_0 = arith.constant 0 : index
    %0 = vector.load %arg1[%c0, %c0_0] : memref<1x512xi32, #tpu.memory_space<vmem>>, vector<1x512xi32>
    %1 = tpu.iota {dimensions = array<i32: 0>} : vector<256x512xi32>
    %2 = vector.broadcast %0 : vector<1x512xi32> to vector<256x512xi32>
    %3 = arith.cmpi eq, %1, %2 : vector<256x512xi32>
    %4 = arith.extui %3 : vector<256x512xi1> to vector<256x512xi32>
    %5 = arith.sitofp %4 : vector<256x512xi32> to vector<256x512xf32>
    %6 = arith.truncf %5 : vector<256x512xf32> to vector<256x512xbf16>
    %c0_1 = arith.constant 0 : index
    %c0_2 = arith.constant 0 : index
    %7 = vector.load %arg2[%c0_1, %c0_2] : memref<128x256xbf16, #tpu.memory_space<vmem>>, vector<128x256xbf16>
    %cst = arith.constant dense<0.000000e+00> : vector<128x512xf32>
    %8 = tpu.matmul %7, %6, %cst {dimension_numbers = #tpu.dot_dimension_numbers<[1], [0], [0], [1], [0, 0, 1, 1], [], []>} : vector<128x256xbf16>, vector<256x512xbf16>, vector<128x512xf32> -> vector<128x512xf32>
    %9 = vector.extract_strided_slice %8 {offsets = [0, 0], sizes = [128, 256], strides = [1, 1]} : vector<128x512xf32> to vector<128x256xf32>
    %10 = vector.extract_strided_slice %8 {offsets = [0, 256], sizes = [128, 256], strides = [1, 1]} : vector<128x512xf32> to vector<128x256xf32>
    %11 = arith.mulf %9, %10 : vector<128x256xf32>
    %cst_3 = arith.constant dense<0.000000e+00> : vector<256xf32>
    %12 = vector.multi_reduction <add>, %11, %cst_3 [0] : vector<128x256xf32> to vector<256xf32>
    %13 = vector.shape_cast %12 : vector<256xf32> to vector<1x256xf32>
    %c0_4 = arith.constant 0 : index
    %c0_5 = arith.constant 0 : index
    %14 = vector.load %arg3[%c0_4, %c0_5] : memref<1x256xf32, #tpu.memory_space<vmem>>, vector<1x256xf32>
    tpu.vector_store %arg3[%c0_4, %c0_5], %13 {strides = array<i32>} : memref<1x256xf32, #tpu.memory_space<vmem>>, vector<1x256xf32>,
    return
  }
  func.func @transform_0(%arg0: i32) -> (i32, i32) {
    %c0_i32 = arith.constant 0 : i32
    %c0_i32_0 = arith.constant 0 : i32
    return %c0_i32, %arg0 : i32, i32
  }
  func.func @transform_1(%arg0: i32) -> (i32, i32) {
    %c0_i32 = arith.constant 0 : i32
    %c0_i32_0 = arith.constant 0 : i32
    %c0_i32_1 = arith.constant 0 : i32
    return %c0_i32, %c0_i32_0 : i32, i32
  }
  func.func @transform_2(%arg0: i32) -> (i32, i32) {
    %c0_i32 = arith.constant 0 : i32
    %c0_i32_0 = arith.constant 0 : i32
    return %c0_i32, %arg0 : i32, i32
  }
}

</mosaic_0001>

<bundles_post_ra>
// kernel: tpu_custom_call.1
= control target key start
LH: loop header
LB: loop body
LE: loop exit
PB: predicated region body
PF: predicated region fallthrough
CT: control target
= control target key end

     0   :  { %7 = vsyncpa [#allocation3], 0  ;;  %s2704_s0 = inlined_call_operand.hbm [shape: s32[1,1024], index: 0, kind: input, shape index: {}]   ;;  %s2705_s1 = inlined_call_operand.hbm [shape: bf16[128,256], index: 1, kind: input, shape index: {}]   ;;  %s2706_s2 = inlined_call_operand.hbm [shape: f32[1,512], index: 2, kind: output, shape index: {}]  }
   0x1   :  { %9 = vsyncpa [#allocation3 + $0x1], 0 }
   0x2   :  { %10 = vsyncpa [#allocation6], 0 }
   0x3   :  { %11 = vsyncpa [#allocation4], 0 }
   0x4   :  { %13 = vsyncpa [#allocation4 + $0x1], 0  ;;  %s1896_s9 = smov 0   ;;  %s1898_s10 = smov 0  }
   0x5   :  { %s1900_s11 = smov 0   ;;  %s1902_s12 = smov 0  }
   0x6 LB: > { %s108_s15 = sshll.u32 %s2705_s1, 4  ;;  %s1920_s16 = sadd.s32 4294967295, %s1875_s12   ;;  %s1875_s12 = sphi %s1902_s12, %s2716_s12   ;;  %s1871_s11 = sphi %s1900_s11, %s2715_s11   ;;  %s1867_s10 = sphi %s1898_s10, %s2714_s10   ;;  %s1863_s9 = sphi %s1896_s9, %s2713_s9   ;;  %s109_s15 = int_to_ptr.hbm [resolvable:$true] %s108_s15 }
   0x7   : > { %p1336_p0 = scmp.ge.s32.totalorder %s1875_s12, 1  ;;  %p40_p1 = scmp.eq.s32.totalorder %s1920_s16, 0 }
   0x8   : > { %p97_p2 = scmp.lt.s32.totalorder %s1875_s12, 3  ;;  %s1877_s18 = smov [#allocation5]  }
   0x9   : > { %s110_s19 = sshll.u32 %s1877_s18, 4  ;;  %s1878_s20 = smov 128   ;;  %s111_s19 = int_to_ptr.vmem [resolvable:$true] %s110_s19 }
   0xa   : > { %p1925_p3 = pnand %p1336_p0, %p97_p2  ;;  %s1879_s21 = smov 8  }
   0xb   : > { %s1335_s22 = sadd.s32 4294967294, %s1875_s12   ;;  %s1936_s23 = sadd.s32 1, %s1875_s12  }
   0xc   : > { %p1693_p4 = pneg %p1925_p3  ;;  %s26_s24 = sadd.s32 1, %s1871_s11 }
   0xd   : > { %s23_s25 = ssub.s32 %s1875_s12, %s1936_s23  ;;  %p33_p7 = scmp.ne.s32.totalorder %s1871_s11, %s1867_s10 }
   0xe   : > { %p1694_p6 = pnand %p1693_p4, %p40_p1  ;;  %p24_p8 = scmp.eq.s32.totalorder %s23_s25, 0 }
   0xf   : > { %p34_p9 = scmp.eq.s32.totalorder %s1875_s12, 0  ;;  %p39_p10 = scmp.ne.s32.totalorder %s1867_s10, %s1863_s9 }
  0x10   : > { %1696 = dma.hbm_to_vmem [thread:$0]  (!%p1694_p6), %s109_s15, 2048, %s111_s19, [#allocation6], %s1878_s20, %s1878_s20, %s1879_s21  }
  0x11   : > { %p84_p11 = scmp.eq.s32.totalorder %s1920_s16, 1  ;;  %p1952_p12 = por %p40_p1, %p39_p10 }
  0x12   : > { %s1948_s26 = scalar_select %p24_p8, %s1871_s11, %s26_s24  }
  0x13   : > { %p1956_p13 = por %p84_p11, %p33_p7  ;;  %p90_p0 = scmp.eq.s32.totalorder %s1335_s22, 1 }
  0x14   : > { %p35_p2 = por %p34_p9, %p33_p7  ;;  %s124_s29 = sand.u32 1, %s1871_s11  }
  0x15   : > { %p1961_p4 = por %p90_p0, %p39_p10  ;;  %p1706_p6 = scmp.lt.s32.totalorder %s1875_s12, 2 }
  0x16   : > { %s1339_s3 = sshll.u32 %s124_s29, 2  ;;  %s1340_s4 = sshll.u32 %s1875_s12, 2 }
  0x17   : > { %s132_s7 = scalar_lea.hbm %s2704_s0, %s1340_s4  ;;  %s128_s13 = scalar_lea.vmem [#allocation2], %s1339_s3 }
  0x18   : > { %s134_s8 = sshll.u32 %s132_s7, 4  ;;  %s136_s14 = sshll.u32 %s128_s13, 4  ;;  %s135_s8 = int_to_ptr.hbm [resolvable:$true] %s134_s8  ;;  %s137_s14 = int_to_ptr.vmem [resolvable:$true] %s136_s14 }
  0x19   : > { %p1970_p8 = pnand %p1706_p6, %p35_p2  ;;  %s125_s18 = scalar_lea.sflag [#allocation3], %s124_s29 }
  0x1a   : > { %s1775_s19 = sshra.s32 %s135_s8, 4  ;;  %s1782_s24 = scalar_lea.hbm %s2704_s0, 8  ;;  %s1776_s19 = int_to_ptr.hbm [resolvable:$true] %s1775_s19 }
  0x1b   : > { %s1777_s20 = scalar_lea.hbm %s1776_s19, 4  ;;  %p1779_p9 = pneg %p1970_p8 }
  0x1c   : > { %p1778_p7 = scmp.ne.s32.totalorder %s1776_s19, %s1777_s20  ;;  %p1783_p0 = scmp.lt.s32.totalorder %s1776_s19, %s2704_s0 }
  0x1d   : > { %p1784_p2 = scmp.lt.s32.totalorder %s1782_s24, %s1777_s20 }
  0x1e   : > { %p1780_p10 = pnand %p1779_p9, %p1778_p7 }
  0x1f   : > { %p1785_p6 = por %p1784_p2, %p1783_p0 }
  0x20   : > { %p1781_p11 = pneg %p1780_p10 }
  0x22   : > { %p1786_p5 = pnand %p1785_p6, %p1781_p11 }
  0x24   : > { %1789 = shalt.err (!%p1786_p5)
}
  0x25   : > { %1700 = dma.hbm_to_vmem [thread:$0]  (!%p1970_p8), %s135_s8, 64, %s137_s14, %s125_s18  }
  0x26   : > { %145 = sbr.rel (%p1925_p3) target bundleno = 492 (0x1ec), region = 28  ;;  %s1987_s29 = sand.u32 (!%p1925_p3), 1, %s1867_s10  }
  0x27   : > { %s1342_s4 = sshll.u32 (!%p1925_p3), %s1987_s29, 2  ;;  %s148_s5 = scalar_lea.sflag (!%p1925_p3), [#allocation3], %s1987_s29 }
  0x28   : > { %s151_s6 = scalar_lea.vmem (!%p1925_p3), [#allocation2], %s1342_s4 }
  0x2b   : > { %1850 = dma.done.wait (%p1952_p12), %s148_s5, 64  }
  0x2c   : > { %1852 = vsyncadd (%p1952_p12), %s148_s5, 4294967232 }
  0x2d   : > { %1854 = dma.done.wait (%p40_p1), [#allocation6], 2048  }
  0x2e   : > { %1856 = vsyncadd (%p40_p1), [#allocation6], 4294965248  ;;  %v181_v0 = vlaneseq  ;;  %v2014_v6 = vld [vmem:[%s151_s6] sm:$0xf]  ;;  %v1880_v13 = vmov 1.0|1.0  }
  0x2f   : > { %v2017_v7 = vperm.slane %v2014_v6, 0  ;;  %v2020_v8 = vperm.slane %v2014_v6, 1  ;;  %v1475_v37 = vld [vmem:[#allocation5] sm:$0xf]  ;;  %v1670_v38 = vld [vmem:[#allocation5 + $0x4] sm:$0xf0] }
  0x30   : > { %v2000_v1 = vshrl.u32 %v181_v0, 7  ;;  %v2278_v39 = vperm.slane %v2014_v6, 3  ;;  %v1669_v40 = vld [vmem:[#allocation5 + $0x4] sm:$0xf]  ;;  %v1477_v41 = vld [vmem:[#allocation5 + $0x8] sm:$0xf0]  ;;  %v2310_v43 = vor.u32 %v1670_v38, %v1475_v37 }
  0x31   : > { %v2297_v42 = vperm.slane %v2014_v6, 2  ;;  %v2316_v44 = vor.u32 %v1669_v40, %v1477_v41  ;;  %v1483_v45 = vld [vmem:[#allocation5 + $0x10] sm:$0xf]  ;;  %v1672_v46 = vld [vmem:[#allocation5 + $0x14] sm:$0xf0]  ;;  %s1344_s17 = sshll.u32 %s1987_s29, 1 }
  0x32   : > { %v2003_v2 = vadd.s32 112, %v2000_v1  ;;  %v2006_v3 = vadd.s32 120, %v2000_v1  ;;  %v2009_v4 = vadd.s32 240, %v2000_v1  ;;  %v2012_v5 = vadd.s32 248, %v2000_v1  ;;  %v1671_v47 = vld [vmem:[#allocation5 + $0x14] sm:$0xf] }
  0x33   : > { %v2023_v9 = vadd.s32 96, %v2000_v1  ;;  %v2026_v10 = vadd.s32 104, %v2000_v1  ;;  %v2029_v11 = vadd.s32 224, %v2000_v1  ;;  %v2032_v12 = vadd.s32 232, %v2000_v1  ;;  %v1485_v48 = vld [vmem:[#allocation5 + $0x18] sm:$0xf0] }
  0x34   : > { %vm274_vm0 = vcmp.eq.s32.totalorder %v2003_v2, %v2017_v7  ;;  %vm278_vm1 = vcmp.eq.s32.totalorder %v2006_v3, %v2017_v7  ;;  %vm338_vm2 = vcmp.eq.s32.totalorder %v2009_v4, %v2017_v7  ;;  %vm342_vm3 = vcmp.eq.s32.totalorder %v2012_v5, %v2017_v7  ;;  %v1491_v51 = vld [vmem:[#allocation5 + $0x20] sm:$0xf]  ;;  %v1674_v52 = vld [vmem:[#allocation5 + $0x24] sm:$0xf0]  ;;  %v1673_v53 = vld [vmem:[#allocation5 + $0x24] sm:$0xf] }
  0x35   : > { %vm1537_vm4 = vmpackc.low %vm278_vm1, %vm274_vm0  ;;  %vm275_vm5 = vcmp.eq.s32.totalorder %v2003_v2, %v2020_v8  ;;  %vm279_vm6 = vcmp.eq.s32.totalorder %v2006_v3, %v2020_v8  ;;  %vm339_vm7 = vcmp.eq.s32.totalorder %v2009_v4, %v2020_v8  ;;  %vm343_vm8 = vcmp.eq.s32.totalorder %v2012_v5, %v2020_v8  ;;  %v1493_v54 = vld [vmem:[#allocation5 + $0x28] sm:$0xf0]  ;;  %v1499_v57 = vld [vmem:[#allocation5 + $0x30] sm:$0xf]  ;;  %s1666_s27 = sshll.u32 %s1920_s16, 1  ;;  %s177_s14 = scalar_lea.vmem [#allocation7], %s1344_s17 }
  0x36   : > { %1538 = vmatpush.bf16.msk.msra.mxu0 %vm1537_vm4, %v1880_v13  ;;  %vm1553_vm9 = vmpackc.low %vm342_vm3, %vm338_vm2  ;;  %vm266_vm10 = vcmp.eq.s32.totalorder %v2023_v9, %v2017_v7  ;;  %vm270_vm11 = vcmp.eq.s32.totalorder %v2026_v10, %v2017_v7  ;;  %v2056_v14 = vadd.s32 80, %v2000_v1  ;;  %v2059_v15 = vadd.s32 88, %v2000_v1  ;;  %v1676_v58 = vld [vmem:[#allocation5 + $0x34] sm:$0xf0]  ;;  %v1675_v59 = vld [vmem:[#allocation5 + $0x34] sm:$0xf]  ;;  %s1250_s13 = scalar_lea.hbm %s2706_s2, %s1666_s27 }
  0x37   : > { %1554 = vmatpush.bf16.msk.msra.mxu1 %vm1553_vm9, %v1880_v13  ;;  %vm1569_vm12 = vmpackc.low %vm279_vm6, %vm275_vm5  ;;  %vm330_vm13 = vcmp.eq.s32.totalorder %v2029_v11, %v2017_v7  ;;  %vm334_vm14 = vcmp.eq.s32.totalorder %v2032_v12, %v2017_v7  ;;  %v2067_v16 = vadd.s32 208, %v2000_v1  ;;  %v2070_v17 = vadd.s32 216, %v2000_v1  ;;  %v1501_v60 = vld [vmem:[#allocation5 + $0x38] sm:$0xf0]  ;;  %v1507_v63 = vld [vmem:[#allocation5 + $0x40] sm:$0xf] }
  0x38   : > { %1570 = vmatpush.bf16.msk.msra.mxu2 %vm1569_vm12, %v1880_v13  ;;  %vm1585_vm15 = vmpackc.low %vm343_vm8, %vm339_vm7  ;;  %vm267_vm0 = vcmp.eq.s32.totalorder %v2023_v9, %v2020_v8  ;;  %vm271_vm1 = vcmp.eq.s32.totalorder %v2026_v10, %v2020_v8  ;;  %vm331_vm3 = vcmp.eq.s32.totalorder %v2029_v11, %v2020_v8  ;;  %vm335_vm4 = vcmp.eq.s32.totalorder %v2032_v12, %v2020_v8  ;;  %s1252_s15 = sshll.u32 %s177_s14, 4  ;;  %s1254_s18 = sshll.u32 %s1250_s13, 4  ;;  %s1253_s15 = int_to_ptr.vmem [resolvable:$true] %s1252_s15  ;;  %s1255_s18 = int_to_ptr.hbm [resolvable:$true] %s1254_s18 }
  0x39   : > { %1586 = vmatpush.bf16.msk.msra.mxu3 %vm1585_vm15, %v1880_v13  ;;  %vm1539_vm2 = vmpackc.low %vm270_vm11, %vm266_vm10  ;;  %vm258_vm6 = vcmp.eq.s32.totalorder %v2056_v14, %v2017_v7  ;;  %vm262_vm7 = vcmp.eq.s32.totalorder %v2059_v15, %v2017_v7  ;;  %v2097_v18 = vadd.s32 64, %v2000_v1  ;;  %v2100_v19 = vadd.s32 72, %v2000_v1  ;;  %s1240_s16 = scalar_lea.sflag [#allocation4], %s1987_s29  ;;  %s1819_s19 = sshra.s32 %s1255_s18, 4  ;;  %s1820_s19 = int_to_ptr.hbm [resolvable:$true] %s1819_s19 }
  0x3a   : > { %1540 = vmatpush.bf16.msk.msra.mxu0 %vm1539_vm2, %v1880_v13  ;;  %vm1555_vm5 = vmpackc.low %vm334_vm14, %vm330_vm13  ;;  %vm322_vm9 = vcmp.eq.s32.totalorder %v2067_v16, %v2017_v7  ;;  %vm326_vm10 = vcmp.eq.s32.totalorder %v2070_v17, %v2017_v7  ;;  %v2108_v20 = vadd.s32 192, %v2000_v1  ;;  %v2111_v21 = vadd.s32 200, %v2000_v1  ;;  %s1821_s20 = scalar_lea.hbm %s1820_s19, 2  ;;  %s1825_s24 = scalar_lea.hbm %s2706_s2, 4 }
  0x3b   : > { %1556 = vmatpush.bf16.msk.msra.mxu1 %vm1555_vm5, %v1880_v13  ;;  %vm1571_vm8 = vmpackc.low %vm271_vm1, %vm267_vm0  ;;  %vm259_vm12 = vcmp.eq.s32.totalorder %v2056_v14, %v2020_v8  ;;  %vm263_vm13 = vcmp.eq.s32.totalorder %v2059_v15, %v2020_v8  ;;  %vm323_vm15 = vcmp.eq.s32.totalorder %v2067_v16, %v2020_v8  ;;  %vm327_vm0 = vcmp.eq.s32.totalorder %v2070_v17, %v2020_v8  ;;  %p1822_p1 = scmp.ne.s32.totalorder %s1820_s19, %s1821_s20  ;;  %p1826_p12 = scmp.lt.s32.totalorder %s1820_s19, %s2706_s2 }
  0x3c   : > { %1572 = vmatpush.bf16.msk.msra.mxu2 %vm1571_vm8, %v1880_v13  ;;  %vm1587_vm11 = vmpackc.low %vm335_vm4, %vm331_vm3  ;;  %vm250_vm2 = vcmp.eq.s32.totalorder %v2097_v18, %v2017_v7  ;;  %vm254_vm3 = vcmp.eq.s32.totalorder %v2100_v19, %v2017_v7  ;;  %v2135_v22 = vadd.s32 48, %v2000_v1  ;;  %v2138_v23 = vadd.s32 56, %v2000_v1  ;;  %p1827_p8 = scmp.lt.s32.totalorder %s1825_s24, %s1821_s20 }
  0x3d   : > { %1588 = vmatpush.bf16.msk.msra.mxu3 %vm1587_vm11, %v1880_v13  ;;  %vm1541_vm14 = vmpackc.low %vm262_vm7, %vm258_vm6  ;;  %vm314_vm5 = vcmp.eq.s32.totalorder %v2108_v20, %v2017_v7  ;;  %vm318_vm6 = vcmp.eq.s32.totalorder %v2111_v21, %v2017_v7  ;;  %v2146_v24 = vadd.s32 176, %v2000_v1  ;;  %v2149_v25 = vadd.s32 184, %v2000_v1  ;;  %p1823_p3 = pnand %p1822_p1, %p1956_p13 }
  0x3e   : > { %1542 = vmatpush.bf16.msk.msra.mxu0 %vm1541_vm14, %v1880_v13  ;;  %vm1557_vm1 = vmpackc.low %vm326_vm10, %vm322_vm9  ;;  %vm251_vm8 = vcmp.eq.s32.totalorder %v2097_v18, %v2020_v8  ;;  %vm255_vm9 = vcmp.eq.s32.totalorder %v2100_v19, %v2020_v8  ;;  %vm315_vm11 = vcmp.eq.s32.totalorder %v2108_v20, %v2020_v8  ;;  %vm242_vm14 = vcmp.eq.s32.totalorder %v2135_v22, %v2017_v7  ;;  %p1828_p7 = por %p1827_p8, %p1826_p12 }
  0x3f   : > { %1558 = vmatpush.bf16.msk.msra.mxu1 %vm1557_vm1, %v1880_v13  ;;  %vm1573_vm4 = vmpackc.low %vm263_vm13, %vm259_vm12  ;;  %vm319_vm12 = vcmp.eq.s32.totalorder %v2111_v21, %v2020_v8  ;;  %v2173_v26 = vadd.s32 32, %v2000_v1  ;;  %v2176_v27 = vadd.s32 40, %v2000_v1  ;;  %vm306_vm1 = vcmp.eq.s32.totalorder %v2146_v24, %v2017_v7  ;;  %p1824_p5 = pneg %p1823_p3 }
  0x40   : > { %1574 = vmatpush.bf16.msk.msra.mxu2 %vm1573_vm4, %v1880_v13  ;;  %vm1589_vm7 = vmpackc.low %vm327_vm0, %vm323_vm15  ;;  %vm246_vm15 = vcmp.eq.s32.totalorder %v2138_v23, %v2017_v7  ;;  %v2184_v28 = vadd.s32 160, %v2000_v1  ;;  %v2187_v29 = vadd.s32 168, %v2000_v1  ;;  %vm243_vm4 = vcmp.eq.s32.totalorder %v2135_v22, %v2020_v8 }
  0x41   : > { %1590 = vmatpush.bf16.msk.msra.mxu3 %vm1589_vm7, %v1880_v13  ;;  %vm1543_vm10 = vmpackc.low %vm254_vm3, %vm250_vm2  ;;  %vm310_vm2 = vcmp.eq.s32.totalorder %v2149_v25, %v2017_v7  ;;  %vm307_vm7 = vcmp.eq.s32.totalorder %v2146_v24, %v2020_v8  ;;  %v2211_v30 = vadd.s32 16, %v2000_v1  ;;  %v2214_v31 = vadd.s32 24, %v2000_v1  ;;  %p1829_p9 = pnand %p1828_p7, %p1824_p5 }
  0x42   : > { %1544 = vmatpush.bf16.msk.msra.mxu0 %vm1543_vm10, %v1880_v13  ;;  %vm1559_vm13 = vmpackc.low %vm318_vm6, %vm314_vm5  ;;  %vm247_vm5 = vcmp.eq.s32.totalorder %v2138_v23, %v2020_v8  ;;  %vm234_vm10 = vcmp.eq.s32.totalorder %v2173_v26, %v2017_v7  ;;  %v2222_v32 = vadd.s32 144, %v2000_v1  ;;  %v2225_v33 = vadd.s32 152, %v2000_v1 }
  0x43   : > { %1560 = vmatpush.bf16.msk.msra.mxu1 %vm1559_vm13, %v1880_v13  ;;  %vm1575_vm0 = vmpackc.low %vm255_vm9, %vm251_vm8  ;;  %vm311_vm8 = vcmp.eq.s32.totalorder %v2149_v25, %v2020_v8  ;;  %vm298_vm13 = vcmp.eq.s32.totalorder %v2184_v28, %v2017_v7  ;;  %v2249_v34 = vadd.s32 8, %v2000_v1  ;;  %v2257_v35 = vadd.s32 128, %v2000_v1 }
  0x44   : > { %1576 = vmatpush.bf16.msk.msra.mxu2 %vm1575_vm0, %v1880_v13  ;;  %vm1591_vm3 = vmpackc.low %vm319_vm12, %vm315_vm11  ;;  %vm238_vm11 = vcmp.eq.s32.totalorder %v2176_v27, %v2017_v7  ;;  %vm235_vm0 = vcmp.eq.s32.totalorder %v2173_v26, %v2020_v8  ;;  %v2260_v36 = vadd.s32 136, %v2000_v1  ;;  %v2384_v49 = vor.u32 %v1672_v46, %v1483_v45 }
  0x45   : > { %1592 = vmatpush.bf16.msk.msra.mxu3 %vm1591_vm3, %v1880_v13  ;;  %vm1545_vm6 = vmpackc.low %vm246_vm15, %vm242_vm14  ;;  %vm302_vm14 = vcmp.eq.s32.totalorder %v2187_v29, %v2017_v7  ;;  %vm299_vm3 = vcmp.eq.s32.totalorder %v2184_v28, %v2020_v8  ;;  %v2387_v50 = vor.u32 %v1671_v47, %v1485_v48  ;;  %v2413_v55 = vor.u32 %v1674_v52, %v1491_v51 }
  0x46   : > { %1546 = vmatpush.bf16.msk.msra.mxu0 %vm1545_vm6, %v1880_v13  ;;  %vm1561_vm9 = vmpackc.low %vm310_vm2, %vm306_vm1  ;;  %vm239_vm1 = vcmp.eq.s32.totalorder %v2176_v27, %v2020_v8  ;;  %vm226_vm6 = vcmp.eq.s32.totalorder %v2211_v30, %v2017_v7  ;;  %v2415_v56 = vor.u32 %v1673_v53, %v1493_v54  ;;  %v2441_v61 = vor.u32 %v1676_v58, %v1499_v57 }
  0x47   : > { %1562 = vmatpush.bf16.msk.msra.mxu1 %vm1561_vm9, %v1880_v13  ;;  %vm1577_vm12 = vmpackc.low %vm247_vm5, %vm243_vm4  ;;  %vm303_vm4 = vcmp.eq.s32.totalorder %v2187_v29, %v2020_v8  ;;  %vm290_vm9 = vcmp.eq.s32.totalorder %v2222_v32, %v2017_v7  ;;  %v2443_v62 = vor.u32 %v1675_v59, %v1501_v60 }
  0x48   : > { %1578 = vmatpush.bf16.msk.msra.mxu2 %vm1577_vm12, %v1880_v13  ;;  %vm1593_vm15 = vmpackc.low %vm311_vm8, %vm307_vm7  ;;  %vm230_vm7 = vcmp.eq.s32.totalorder %v2214_v31, %v2017_v7  ;;  %vm227_vm12 = vcmp.eq.s32.totalorder %v2211_v30, %v2020_v8 }
  0x49   : > { %1594 = vmatpush.bf16.msk.msra.mxu3 %vm1593_vm15, %v1880_v13  ;;  %vm1547_vm2 = vmpackc.low %vm238_vm11, %vm234_vm10  ;;  %vm294_vm10 = vcmp.eq.s32.totalorder %v2225_v33, %v2017_v7  ;;  %vm291_vm15 = vcmp.eq.s32.totalorder %v2222_v32, %v2020_v8 }
  0x4a   : > { %1548 = vmatpush.bf16.msk.msra.mxu0 %vm1547_vm2, %v1880_v13  ;;  %vm1563_vm5 = vmpackc.low %vm302_vm14, %vm298_vm13  ;;  %vm231_vm13 = vcmp.eq.s32.totalorder %v2214_v31, %v2020_v8  ;;  %vm218_vm2 = vcmp.eq.s32.totalorder %v2000_v1, %v2017_v7 }
  0x4b   : > { %1564 = vmatpush.bf16.msk.msra.mxu1 %vm1563_vm5, %v1880_v13  ;;  %vm1579_vm8 = vmpackc.low %vm239_vm1, %vm235_vm0  ;;  %vm295_vm0 = vcmp.eq.s32.totalorder %v2225_v33, %v2020_v8  ;;  %vm282_vm5 = vcmp.eq.s32.totalorder %v2257_v35, %v2017_v7 }
  0x4c   : > { %1580 = vmatpush.bf16.msk.msra.mxu2 %vm1579_vm8, %v1880_v13  ;;  %vm1595_vm11 = vmpackc.low %vm303_vm4, %vm299_vm3  ;;  %vm222_vm3 = vcmp.eq.s32.totalorder %v2249_v34, %v2017_v7  ;;  %vm219_vm8 = vcmp.eq.s32.totalorder %v2000_v1, %v2020_v8 }
  0x4d   : > { %1596 = vmatpush.bf16.msk.msra.mxu3 %vm1595_vm11, %v1880_v13  ;;  %vm1549_vm14 = vmpackc.low %vm230_vm7, %vm226_vm6  ;;  %vm286_vm6 = vcmp.eq.s32.totalorder %v2260_v36, %v2017_v7  ;;  %vm283_vm11 = vcmp.eq.s32.totalorder %v2257_v35, %v2020_v8  ;;  %v1515_v7 = vld [vmem:[#allocation5 + $0x50] sm:$0xf] }
  0x4e   : > { %1550 = vmatpush.bf16.msk.msra.mxu0 %vm1549_vm14, %v1880_v13  ;;  %vm1565_vm1 = vmpackc.low %vm294_vm10, %vm290_vm9  ;;  %vm223_vm9 = vcmp.eq.s32.totalorder %v2249_v34, %v2020_v8  ;;  %vm277_vm14 = vcmp.eq.s32.totalorder %v2003_v2, %v2278_v39 }
  0x4f   : > { %1566 = vmatpush.bf16.msk.msra.mxu1 %vm1565_vm1, %v1880_v13  ;;  %vm1581_vm4 = vmpackc.low %vm231_vm13, %vm227_vm12  ;;  %vm287_vm12 = vcmp.eq.s32.totalorder %v2260_v36, %v2020_v8  ;;  %vm341_vm1 = vcmp.eq.s32.totalorder %v2009_v4, %v2278_v39  ;;  %v1680_v8 = vld [vmem:[#allocation5 + $0x54] sm:$0xf0] }
  0x50   : > { %1582 = vmatpush.bf16.msk.msra.mxu2 %vm1581_vm4, %v1880_v13  ;;  %vm1597_vm7 = vmpackc.low %vm295_vm0, %vm291_vm15  ;;  %vm281_vm15 = vcmp.eq.s32.totalorder %v2006_v3, %v2278_v39  ;;  %vm276_vm4 = vcmp.eq.s32.totalorder %v2003_v2, %v2297_v42  ;;  %v1678_v2 = vld [vmem:[#allocation5 + $0x44] sm:$0xf0] }
  0x51   : > { %1598 = vmatpush.bf16.msk.msra.mxu3 %vm1597_vm7, %v1880_v13  ;;  %vm1551_vm10 = vmpackc.low %vm222_vm3, %vm218_vm2  ;;  %vm345_vm2 = vcmp.eq.s32.totalorder %v2012_v5, %v2278_v39  ;;  %vm340_vm7 = vcmp.eq.s32.totalorder %v2009_v4, %v2297_v42  ;;  %v1509_v4 = vld [vmem:[#allocation5 + $0x48] sm:$0xf0] }
  0x52   : > { %1552 = vmatpush.bf16.msk.msra.mxu0 %vm1551_vm10, %v1880_v13  ;;  %vm1567_vm13 = vmpackc.low %vm286_vm6, %vm282_vm5  ;;  %vm280_vm5 = vcmp.eq.s32.totalorder %v2006_v3, %v2297_v42  ;;  %vm269_vm10 = vcmp.eq.s32.totalorder %v2023_v9, %v2278_v39  ;;  %v1677_v3 = vld [vmem:[#allocation5 + $0x44] sm:$0xf] }
  0x53   : > { %1568 = vmatpush.bf16.msk.msra.mxu1 %vm1567_vm13, %v1880_v13  ;;  %vm1583_vm0 = vmpackc.low %vm223_vm9, %vm219_vm8  ;;  %vm344_vm8 = vcmp.eq.s32.totalorder %v2012_v5, %v2297_v42  ;;  %vm333_vm13 = vcmp.eq.s32.totalorder %v2029_v11, %v2278_v39  ;;  %v2469_v5 = vor.u32 %v1678_v2, %v1507_v63  ;;  %v2471_v6 = vor.u32 %v1677_v3, %v1509_v4 }
  0x54   : > { %1584 = vmatpush.bf16.msk.msra.mxu2 %vm1583_vm0, %v1880_v13  ;;  %vm1599_vm3 = vmpackc.low %vm287_vm12, %vm283_vm11  ;;  %vm273_vm11 = vcmp.eq.s32.totalorder %v2026_v10, %v2278_v39  ;;  %vm268_vm0 = vcmp.eq.s32.totalorder %v2023_v9, %v2297_v42  ;;  %v1679_v9 = vld [vmem:[#allocation5 + $0x54] sm:$0xf] }
  0x55   : > { %1600 = vmatpush.bf16.msk.msra.mxu3 %vm1599_vm3, %v1880_v13  ;;  %770 = vmatmul.bf16.vlgmr.msra.gmra.mxu0 %v2310_v43  ;;  %vm1633_vm6 = vmpackc.low %vm281_vm15, %vm277_vm14  ;;  %vm337_vm14 = vcmp.eq.s32.totalorder %v2032_v12, %v2278_v39  ;;  %vm332_vm3 = vcmp.eq.s32.totalorder %v2029_v11, %v2297_v42  ;;  %v2497_v11 = vor.u32 %v1680_v8, %v1515_v7 }
  0x56   : > { %819 = vmatmul.bf16.vlgmr.msra.gmra.mxu1 %v2316_v44  ;;  %vm1649_vm9 = vmpackc.low %vm345_vm2, %vm341_vm1  ;;  %vm272_vm1 = vcmp.eq.s32.totalorder %v2026_v10, %v2297_v42  ;;  %v1517_v10 = vld [vmem:[#allocation5 + $0x58] sm:$0xf0] }
  0x57   : > { %868 = vmatmul.bf16.vlgmr.msra.gmra.mxu2 %v2310_v43  ;;  %vm1601_vm12 = vmpackc.low %vm280_vm5, %vm276_vm4  ;;  %vm336_vm4 = vcmp.eq.s32.totalorder %v2032_v12, %v2297_v42  ;;  %v2499_v12 = vor.u32 %v1679_v9, %v1517_v10 }
  0x58   : > { %1634 = vmatpush.bf16.msk.msrb.mxu2 %vm1633_vm6, %v1880_v13  ;;  %917 = vmatmul.bf16.vlgmr.msra.gmra.mxu3 %v2316_v44  ;;  %vm1617_vm15 = vmpackc.low %vm344_vm8, %vm340_vm7  ;;  %vm261_vm6 = vcmp.eq.s32.totalorder %v2056_v14, %v2278_v39  ;;  %vm265_vm7 = vcmp.eq.s32.totalorder %v2059_v15, %v2278_v39 }
  0x59   : > { %1650 = vmatpush.bf16.msk.msrb.mxu3 %vm1649_vm9, %v1880_v13  ;;  %1602 = vmatpush.bf16.msk.msrb.mxu0 %vm1601_vm12, %v1880_v13  ;;  %vm1635_vm2 = vmpackc.low %vm273_vm11, %vm269_vm10  ;;  %vm325_vm9 = vcmp.eq.s32.totalorder %v2067_v16, %v2278_v39  ;;  %vm329_vm10 = vcmp.eq.s32.totalorder %v2070_v17, %v2278_v39  ;;  %vm260_vm12 = vcmp.eq.s32.totalorder %v2056_v14, %v2297_v42  ;;  %v1682_v14 = vld [vmem:[#allocation5 + $0x64] sm:$0xf0] }
  0x5a   : > { %1618 = vmatpush.bf16.msk.msrb.mxu1 %vm1617_vm15, %v1880_v13  ;;  %vm1651_vm5 = vmpackc.low %vm337_vm14, %vm333_vm13  ;;  %vm264_vm13 = vcmp.eq.s32.totalorder %v2059_v15, %v2297_v42  ;;  %vm324_vm15 = vcmp.eq.s32.totalorder %v2067_v16, %v2297_v42  ;;  %v1681_v15 = vld [vmem:[#allocation5 + $0x64] sm:$0xf]  ;;  %v1525_v16 = vld [vmem:[#allocation5 + $0x68] sm:$0xf0] }
  0x5b   : > { %vm1603_vm8 = vmpackc.low %vm272_vm1, %vm268_vm0  ;;  %vm328_vm0 = vcmp.eq.s32.totalorder %v2070_v17, %v2297_v42 }
  0x5c   : > { %1636 = vmatpush.bf16.msk.msrb.mxu2 %vm1635_vm2, %v1880_v13  ;;  %vm1619_vm11 = vmpackc.low %vm336_vm4, %vm332_vm3  ;;  %vm253_vm4 = vcmp.eq.s32.totalorder %v2097_v18, %v2278_v39 }
  0x5d   : > { %1652 = vmatpush.bf16.msk.msrb.mxu3 %vm1651_vm5, %v1880_v13  ;;  %1604 = vmatpush.bf16.msk.msrb.mxu0 %vm1603_vm8, %v1880_v13  ;;  %vm1637_vm14 = vmpackc.low %vm265_vm7, %vm261_vm6  ;;  %vm257_vm5 = vcmp.eq.s32.totalorder %v2100_v19, %v2278_v39  ;;  %vm317_vm6 = vcmp.eq.s32.totalorder %v2108_v20, %v2278_v39  ;;  %vm321_vm7 = vcmp.eq.s32.totalorder %v2111_v21, %v2278_v39 }
  0x5e   : > { %1620 = vmatpush.bf16.msk.msrb.mxu1 %vm1619_vm11, %v1880_v13  ;;  %vm1653_vm1 = vmpackc.low %vm329_vm10, %vm325_vm9  ;;  %vm252_vm9 = vcmp.eq.s32.totalorder %v2097_v18, %v2297_v42  ;;  %vm256_vm10 = vcmp.eq.s32.totalorder %v2100_v19, %v2297_v42  ;;  %vm316_vm11 = vcmp.eq.s32.totalorder %v2108_v20, %v2297_v42  ;;  %v2527_v18 = vor.u32 %v1681_v15, %v1525_v16  ;;  %v1531_v19 = vld [vmem:[#allocation5 + $0x70] sm:$0xf]  ;;  %v1684_v20 = vld [vmem:[#allocation5 + $0x74] sm:$0xf0] }
  0x5f   : > { %vm1605_vm2 = vmpackc.low %vm264_vm13, %vm260_vm12  ;;  %vm320_vm12 = vcmp.eq.s32.totalorder %v2111_v21, %v2297_v42  ;;  %v1683_v21 = vld [vmem:[#allocation5 + $0x74] sm:$0xf] }
  0x60   : > { %1638 = vmatpush.bf16.msk.msrb.mxu2 %vm1637_vm14, %v1880_v13  ;;  %vm1621_vm3 = vmpackc.low %vm328_vm0, %vm324_vm15  ;;  %vm245_vm0 = vcmp.eq.s32.totalorder %v2135_v22, %v2278_v39 }
  0x61   : > { %1654 = vmatpush.bf16.msk.msrb.mxu3 %vm1653_vm1, %v1880_v13  ;;  %1606 = vmatpush.bf16.msk.msrb.mxu0 %vm1605_vm2, %v1880_v13  ;;  %vm1639_vm8 = vmpackc.low %vm257_vm5, %vm253_vm4  ;;  %vm249_vm1 = vcmp.eq.s32.totalorder %v2138_v23, %v2278_v39  ;;  %vm309_vm2 = vcmp.eq.s32.totalorder %v2146_v24, %v2278_v39  ;;  %vm244_vm5 = vcmp.eq.s32.totalorder %v2135_v22, %v2297_v42 }
  0x62   : > { %1622 = vmatpush.bf16.msk.msrb.mxu1 %vm1621_vm3, %v1880_v13  ;;  %vm1655_vm13 = vmpackc.low %vm321_vm7, %vm317_vm6  ;;  %vm313_vm3 = vcmp.eq.s32.totalorder %v2149_v25, %v2278_v39  ;;  %vm248_vm6 = vcmp.eq.s32.totalorder %v2138_v23, %v2297_v42  ;;  %vm308_vm7 = vcmp.eq.s32.totalorder %v2146_v24, %v2297_v42  ;;  %v2533_v22 = vor.u32 %v1684_v20, %v1531_v19 }
  0x63   : > { %vm1607_vm14 = vmpackc.low %vm256_vm10, %vm252_vm9 }
  0x64   : > { %1640 = vmatpush.bf16.msk.msrb.mxu2 %vm1639_vm8, %v1880_v13  ;;  %vm1623_vm15 = vmpackc.low %vm320_vm12, %vm316_vm11  ;;  %vm312_vm8 = vcmp.eq.s32.totalorder %v2149_v25, %v2297_v42  ;;  %vm237_vm12 = vcmp.eq.s32.totalorder %v2173_v26, %v2278_v39 }
  0x65   : > { %775 = vmatmul.bf16.gmra.mxu0 %v2384_v49  ;;  %1656 = vmatpush.bf16.msk.msrb.mxu3 %vm1655_vm13, %v1880_v13  ;;  %vm1641_vm4 = vmpackc.low %vm249_vm1, %vm245_vm0  ;;  %vm241_vm13 = vcmp.eq.s32.totalorder %v2176_v27, %v2278_v39  ;;  %vm236_vm1 = vcmp.eq.s32.totalorder %v2173_v26, %v2297_v42 }
  0x66   : > { %824 = vmatmul.bf16.gmra.mxu1 %v2387_v50  ;;  %1608 = vmatpush.bf16.msk.msrb.mxu0 %vm1607_vm14, %v1880_v13  ;;  %vm1657_vm9 = vmpackc.low %vm313_vm3, %vm309_vm2  ;;  %vm301_vm14 = vcmp.eq.s32.totalorder %v2184_v28, %v2278_v39  ;;  %vm240_vm2 = vcmp.eq.s32.totalorder %v2176_v27, %v2297_v42  ;;  %vm300_vm3 = vcmp.eq.s32.totalorder %v2184_v28, %v2297_v42 }
  0x67   : > { %873 = vmatmul.bf16.gmra.mxu2 %v2384_v49  ;;  %1624 = vmatpush.bf16.msk.msrb.mxu1 %vm1623_vm15, %v1880_v13  ;;  %vm1609_vm10 = vmpackc.low %vm248_vm6, %vm244_vm5  ;;  %vm305_vm15 = vcmp.eq.s32.totalorder %v2187_v29, %v2278_v39 }
  0x68   : > { %922 = vmatmul.bf16.gmra.mxu3 %v2387_v50  ;;  %1642 = vmatpush.bf16.msk.msrb.mxu2 %vm1641_vm4, %v1880_v13  ;;  %vm1625_vm11 = vmpackc.low %vm312_vm8, %vm308_vm7  ;;  %vm304_vm4 = vcmp.eq.s32.totalorder %v2187_v29, %v2297_v42  ;;  %vm229_vm8 = vcmp.eq.s32.totalorder %v2211_v30, %v2278_v39 }
  0x69   : > { %1658 = vmatpush.bf16.msk.msrb.mxu3 %vm1657_vm9, %v1880_v13  ;;  %vm1643_vm0 = vmpackc.low %vm241_vm13, %vm237_vm12  ;;  %vm233_vm9 = vcmp.eq.s32.totalorder %v2214_v31, %v2278_v39  ;;  %vm228_vm13 = vcmp.eq.s32.totalorder %v2211_v30, %v2297_v42 }
  0x6a   : > { %1610 = vmatpush.bf16.msk.msrb.mxu0 %vm1609_vm10, %v1880_v13  ;;  %vm1659_vm5 = vmpackc.low %vm305_vm15, %vm301_vm14  ;;  %vm293_vm10 = vcmp.eq.s32.totalorder %v2222_v32, %v2278_v39  ;;  %vm232_vm14 = vcmp.eq.s32.totalorder %v2214_v31, %v2297_v42  ;;  %vm292_vm15 = vcmp.eq.s32.totalorder %v2222_v32, %v2297_v42 }
  0x6b   : > { %1626 = vmatpush.bf16.msk.msrb.mxu1 %vm1625_vm11, %v1880_v13  ;;  %vm1611_vm6 = vmpackc.low %vm240_vm2, %vm236_vm1  ;;  %vm297_vm11 = vcmp.eq.s32.totalorder %v2225_v33, %v2278_v39 }
  0x6c   : > { %1644 = vmatpush.bf16.msk.msrb.mxu2 %vm1643_vm0, %v1880_v13  ;;  %vm1627_vm7 = vmpackc.low %vm304_vm4, %vm300_vm3  ;;  %vm296_vm0 = vcmp.eq.s32.totalorder %v2225_v33, %v2297_v42  ;;  %vm221_vm4 = vcmp.eq.s32.totalorder %v2000_v1, %v2278_v39 }
  0x6d   : > { %1660 = vmatpush.bf16.msk.msrb.mxu3 %vm1659_vm5, %v1880_v13  ;;  %vm1645_vm12 = vmpackc.low %vm233_vm9, %vm229_vm8  ;;  %vm225_vm5 = vcmp.eq.s32.totalorder %v2249_v34, %v2278_v39  ;;  %vm220_vm9 = vcmp.eq.s32.totalorder %v2000_v1, %v2297_v42  ;;  %v1523_v1 = vld [vmem:[#allocation5 + $0x60] sm:$0xf] }
  0x6e   : > { %1612 = vmatpush.bf16.msk.msrb.mxu0 %vm1611_vm6, %v1880_v13  ;;  %vm1661_vm1 = vmpackc.low %vm297_vm11, %vm293_vm10  ;;  %vm285_vm6 = vcmp.eq.s32.totalorder %v2257_v35, %v2278_v39  ;;  %vm224_vm10 = vcmp.eq.s32.totalorder %v2249_v34, %v2297_v42  ;;  %vm284_vm11 = vcmp.eq.s32.totalorder %v2257_v35, %v2297_v42  ;;  %v2525_v17 = vor.u32 %v1682_v14, %v1523_v1 }
  0x6f   : > { %1628 = vmatpush.bf16.msk.msrb.mxu1 %vm1627_vm7, %v1880_v13  ;;  %vm1613_vm2 = vmpackc.low %vm232_vm14, %vm228_vm13  ;;  %vm289_vm7 = vcmp.eq.s32.totalorder %v2260_v36, %v2278_v39 }
  0x70   : > { %1646 = vmatpush.bf16.msk.msrb.mxu2 %vm1645_vm12, %v1880_v13  ;;  %vm1629_vm3 = vmpackc.low %vm296_vm0, %vm292_vm15  ;;  %vm288_vm12 = vcmp.eq.s32.totalorder %v2260_v36, %v2297_v42  ;;  %vm1231_vm0 = vcmask 1040384  }
  0x71   : > { %1662 = vmatpush.bf16.msk.msrb.mxu3 %vm1661_vm1, %v1880_v13  ;;  %vm1647_vm8 = vmpackc.low %vm225_vm5, %vm221_vm4  ;;  %vm1236_vm1 = vcmp.lt.s32.totalorder %v181_v0, 256 }
  0x72   : > { %1614 = vmatpush.bf16.msk.msrb.mxu0 %vm1613_vm2, %v1880_v13  ;;  %vm1663_vm13 = vmpackc.low %vm289_vm7, %vm285_vm6 }
  0x73   : > { %1630 = vmatpush.bf16.msk.msrb.mxu1 %vm1629_vm3, %v1880_v13  ;;  %vm1615_vm14 = vmpackc.low %vm224_vm10, %vm220_vm9 }
  0x74   : > { %1648 = vmatpush.bf16.msk.msrb.mxu2 %vm1647_vm8, %v1880_v13  ;;  %vm1631_vm15 = vmpackc.low %vm288_vm12, %vm284_vm11 }
  0x75   : > { %780 = vmatmul.bf16.gmra.mxu0 %v2413_v55  ;;  %1664 = vmatpush.bf16.msk.msrb.mxu3 %vm1663_vm13, %v1880_v13 }
  0x76   : > { %829 = vmatmul.bf16.gmra.mxu1 %v2415_v56  ;;  %1616 = vmatpush.bf16.msk.msrb.mxu0 %vm1615_vm14, %v1880_v13 }
  0x77   : > { %878 = vmatmul.bf16.gmra.mxu2 %v2413_v55  ;;  %1632 = vmatpush.bf16.msk.msrb.mxu1 %vm1631_vm15, %v1880_v13  ;;  %v1533_v13 = vld [vmem:[#allocation5 + $0x78] sm:$0xf0] }
  0x78   : > { %927 = vmatmul.bf16.gmra.mxu3 %v2415_v56  ;;  %v2535_v23 = vor.u32 %v1683_v21, %v1533_v13 }
  0x85   : > { %785 = vmatmul.bf16.gmra.mxu0 %v2441_v61 }
  0x86   : > { %834 = vmatmul.bf16.gmra.mxu1 %v2443_v62 }
  0x87   : > { %883 = vmatmul.bf16.gmra.mxu2 %v2441_v61 }
  0x88   : > { %932 = vmatmul.bf16.gmra.mxu3 %v2443_v62 }
  0x95   : > { %790 = vmatmul.bf16.gmra.mxu0 %v2469_v5 }
  0x96   : > { %839 = vmatmul.bf16.gmra.mxu1 %v2471_v6 }
  0x97   : > { %888 = vmatmul.bf16.gmra.mxu2 %v2469_v5 }
  0x98   : > { %937 = vmatmul.bf16.gmra.mxu3 %v2471_v6 }
  0xa5   : > { %795 = vmatmul.bf16.gmra.mxu0 %v2497_v11 }
  0xa6   : > { %844 = vmatmul.bf16.gmra.mxu1 %v2499_v12 }
  0xa7   : > { %893 = vmatmul.bf16.gmra.mxu2 %v2497_v11 }
  0xa8   : > { %942 = vmatmul.bf16.gmra.mxu3 %v2499_v12 }
  0xb5   : > { %800 = vmatmul.bf16.gmra.mxu0 %v2525_v17 }
  0xb6   : > { %849 = vmatmul.bf16.gmra.mxu1 %v2527_v18 }
  0xb7   : > { %898 = vmatmul.bf16.gmra.mxu2 %v2525_v17 }
  0xb8   : > { %947 = vmatmul.bf16.gmra.mxu3 %v2527_v18 }
  0xc5   : > { %805 = vmatmul.bf16.gmra.mxu0 %v2533_v22 }
  0xc6   : > { %854 = vmatmul.bf16.gmra.mxu1 %v2535_v23 }
  0xc7   : > { %903 = vmatmul.bf16.gmra.mxu2 %v2533_v22 }
  0xc8   : > { %952 = vmatmul.bf16.gmra.mxu3 %v2535_v23 }
  0xd2   : > { %v771_v24 = vpop.f32.mrf.mxu0 }
  0xd3   : > { %v820_v25 = vpop.f32.mrf.mxu1 }
  0xd4   : > { %v2541_v26 = vadd.f32 %v820_v25, %v771_v24 }
  0xd5   : > { %966 = vmatmul.bf16.vlgmr.msrb.gmra.mxu0 %v2310_v43 }
  0xd6   : > { %1015 = vmatmul.bf16.vlgmr.msrb.gmra.mxu1 %v2316_v44 }
  0xd7   : > { %1064 = vmatmul.bf16.vlgmr.msrb.gmra.mxu2 %v2310_v43 }
  0xd8   : > { %1113 = vmatmul.bf16.vlgmr.msrb.gmra.mxu3 %v2316_v44 }
  0xda   : > { %v869_v27 = vpop.f32.mrf.mxu2  ;;  %v773_v28 = vpop.f32.mrf.mxu0 }
  0xdb   : > { %v918_v29 = vpop.f32.mrf.mxu3  ;;  %v822_v30 = vpop.f32.mrf.mxu1 }
  0xdc   : > { %v2547_v31 = vadd.f32 %v918_v29, %v869_v27  ;;  %v2549_v32 = vadd.f32 %v822_v30, %v773_v28 }
  0xe2   : > { %v871_v33 = vpop.f32.mrf.mxu2  ;;  %v776_v34 = vpop.f32.mrf.mxu0 }
  0xe3   : > { %v920_v35 = vpop.f32.mrf.mxu3  ;;  %v825_v36 = vpop.f32.mrf.mxu1 }
  0xe4   : > { %v2551_v37 = vadd.f32 %v920_v35, %v871_v33  ;;  %v2553_v38 = vadd.f32 %v825_v36, %v776_v34 }
  0xe5   : > { %971 = vmatmul.bf16.gmra.mxu0 %v2384_v49 }
  0xe6   : > { %1020 = vmatmul.bf16.gmra.mxu1 %v2387_v50 }
  0xe7   : > { %1069 = vmatmul.bf16.gmra.mxu2 %v2384_v49 }
  0xe8   : > { %1118 = vmatmul.bf16.gmra.mxu3 %v2387_v50 }
  0xea   : > { %v874_v39 = vpop.f32.mrf.mxu2  ;;  %v778_v40 = vpop.f32.mrf.mxu0 }
  0xeb   : > { %v923_v41 = vpop.f32.mrf.mxu3  ;;  %v827_v42 = vpop.f32.mrf.mxu1 }
  0xec   : > { %v2559_v43 = vadd.f32 %v923_v41, %v874_v39  ;;  %v2561_v44 = vadd.f32 %v827_v42, %v778_v40 }
  0xf2   : > { %v876_v45 = vpop.f32.mrf.mxu2  ;;  %v781_v46 = vpop.f32.mrf.mxu0 }
  0xf3   : > { %v925_v47 = vpop.f32.mrf.mxu3  ;;  %v830_v48 = vpop.f32.mrf.mxu1 }
  0xf4   : > { %v2563_v51 = vadd.f32 %v925_v47, %v876_v45  ;;  %v2565_v52 = vadd.f32 %v830_v48, %v781_v46 }
  0xf5   : > { %976 = vmatmul.bf16.gmra.mxu0 %v2413_v55 }
  0xf6   : > { %1025 = vmatmul.bf16.gmra.mxu1 %v2415_v56 }
  0xf7   : > { %1074 = vmatmul.bf16.gmra.mxu2 %v2413_v55 }
  0xf8   : > { %1123 = vmatmul.bf16.gmra.mxu3 %v2415_v56 }
  0xfa   : > { %v879_v49 = vpop.f32.mrf.mxu2  ;;  %v783_v50 = vpop.f32.mrf.mxu0 }
  0xfb   : > { %v928_v53 = vpop.f32.mrf.mxu3  ;;  %v832_v54 = vpop.f32.mrf.mxu1 }
  0xfc   : > { %v2571_v57 = vadd.f32 %v928_v53, %v879_v49  ;;  %v2573_v58 = vadd.f32 %v832_v54, %v783_v50 }
 0x102   : > { %v881_v59 = vpop.f32.mrf.mxu2  ;;  %v786_v60 = vpop.f32.mrf.mxu0 }
 0x103   : > { %v930_v63 = vpop.f32.mrf.mxu3  ;;  %v835_v2 = vpop.f32.mrf.mxu1 }
 0x104   : > { %v2575_v3 = vadd.f32 %v930_v63, %v881_v59  ;;  %v2577_v4 = vadd.f32 %v835_v2, %v786_v60 }
 0x105   : > { %981 = vmatmul.bf16.gmra.mxu0 %v2441_v61 }
 0x106   : > { %1030 = vmatmul.bf16.gmra.mxu1 %v2443_v62 }
 0x107   : > { %1079 = vmatmul.bf16.gmra.mxu2 %v2441_v61 }
 0x108   : > { %1128 = vmatmul.bf16.gmra.mxu3 %v2443_v62 }
 0x10a   : > { %v884_v55 = vpop.f32.mrf.mxu2  ;;  %v788_v56 = vpop.f32.mrf.mxu0 }
 0x10b   : > { %v933_v7 = vpop.f32.mrf.mxu3  ;;  %v837_v8 = vpop.f32.mrf.mxu1 }
 0x10c   : > { %v2583_v9 = vadd.f32 %v933_v7, %v884_v55  ;;  %v2585_v10 = vadd.f32 %v837_v8, %v788_v56 }
 0x112   : > { %v886_v1 = vpop.f32.mrf.mxu2  ;;  %v791_v14 = vpop.f32.mrf.mxu0 }
 0x113   : > { %v935_v15 = vpop.f32.mrf.mxu3  ;;  %v840_v16 = vpop.f32.mrf.mxu1 }
 0x114   : > { %v2587_v19 = vadd.f32 %v935_v15, %v886_v1  ;;  %v2589_v20 = vadd.f32 %v840_v16, %v791_v14 }
 0x115   : > { %986 = vmatmul.bf16.gmra.mxu0 %v2469_v5 }
 0x116   : > { %1035 = vmatmul.bf16.gmra.mxu1 %v2471_v6 }
 0x117   : > { %1084 = vmatmul.bf16.gmra.mxu2 %v2469_v5 }
 0x118   : > { %1133 = vmatmul.bf16.gmra.mxu3 %v2471_v6 }
 0x11a   : > { %v889_v61 = vpop.f32.mrf.mxu2  ;;  %v793_v62 = vpop.f32.mrf.mxu0 }
 0x11b   : > { %v938_v21 = vpop.f32.mrf.mxu3  ;;  %v842_v13 = vpop.f32.mrf.mxu1 }
 0x11c   : > { %v2595_v24 = vadd.f32 %v938_v21, %v889_v61  ;;  %v2597_v25 = vadd.f32 %v842_v13, %v793_v62 }
 0x122   : > { %v891_v27 = vpop.f32.mrf.mxu2  ;;  %v796_v28 = vpop.f32.mrf.mxu0 }
 0x123   : > { %v940_v29 = vpop.f32.mrf.mxu3  ;;  %v845_v30 = vpop.f32.mrf.mxu1 }
 0x124   : > { %v2599_v33 = vadd.f32 %v940_v29, %v891_v27  ;;  %v2601_v34 = vadd.f32 %v845_v30, %v796_v28 }
 0x125   : > { %991 = vmatmul.bf16.gmra.mxu0 %v2497_v11 }
 0x126   : > { %1040 = vmatmul.bf16.gmra.mxu1 %v2499_v12 }
 0x127   : > { %1089 = vmatmul.bf16.gmra.mxu2 %v2497_v11 }
 0x128   : > { %1138 = vmatmul.bf16.gmra.mxu3 %v2499_v12 }
 0x12a   : > { %v894_v5 = vpop.f32.mrf.mxu2  ;;  %v798_v6 = vpop.f32.mrf.mxu0 }
 0x12b   : > { %v943_v35 = vpop.f32.mrf.mxu3  ;;  %v847_v36 = vpop.f32.mrf.mxu1 }
 0x12c   : > { %v2607_v39 = vadd.f32 %v943_v35, %v894_v5  ;;  %v2609_v40 = vadd.f32 %v847_v36, %v798_v6 }
 0x132   : > { %v896_v41 = vpop.f32.mrf.mxu2  ;;  %v801_v42 = vpop.f32.mrf.mxu0 }
 0x133   : > { %v945_v45 = vpop.f32.mrf.mxu3  ;;  %v850_v46 = vpop.f32.mrf.mxu1 }
 0x134   : > { %v2611_v47 = vadd.f32 %v945_v45, %v896_v41  ;;  %v2613_v48 = vadd.f32 %v850_v46, %v801_v42 }
 0x135   : > { %996 = vmatmul.bf16.gmra.mxu0 %v2525_v17 }
 0x136   : > { %1045 = vmatmul.bf16.gmra.mxu1 %v2527_v18 }
 0x137   : > { %1094 = vmatmul.bf16.gmra.mxu2 %v2525_v17 }
 0x138   : > { %1143 = vmatmul.bf16.gmra.mxu3 %v2527_v18 }
 0x13a   : > { %v899_v11 = vpop.f32.mrf.mxu2  ;;  %v803_v12 = vpop.f32.mrf.mxu0 }
 0x13b   : > { %v948_v49 = vpop.f32.mrf.mxu3  ;;  %v852_v50 = vpop.f32.mrf.mxu1 }
 0x13c   : > { %v2619_v53 = vadd.f32 %v948_v49, %v899_v11  ;;  %v2621_v54 = vadd.f32 %v852_v50, %v803_v12 }
 0x142   : > { %v901_v59 = vpop.f32.mrf.mxu2  ;;  %v806_v60 = vpop.f32.mrf.mxu0 }
 0x143   : > { %v950_v63 = vpop.f32.mrf.mxu3  ;;  %v855_v2 = vpop.f32.mrf.mxu1 }
 0x144   : > { %v2623_v55 = vadd.f32 %v950_v63, %v901_v59  ;;  %v2625_v56 = vadd.f32 %v855_v2, %v806_v60 }
 0x145   : > { %1001 = vmatmul.bf16.gmra.mxu0 %v2533_v22 }
 0x146   : > { %1050 = vmatmul.bf16.gmra.mxu1 %v2535_v23 }
 0x147   : > { %1099 = vmatmul.bf16.gmra.mxu2 %v2533_v22 }
 0x148   : > { %1148 = vmatmul.bf16.gmra.mxu3 %v2535_v23 }
 0x14a   : > { %v904_v17 = vpop.f32.mrf.mxu2  ;;  %v808_v18 = vpop.f32.mrf.mxu0 }
 0x14b   : > { %v953_v7 = vpop.f32.mrf.mxu3  ;;  %v857_v8 = vpop.f32.mrf.mxu1 }
 0x14c   : > { %v2631_v1 = vadd.f32 %v953_v7, %v904_v17  ;;  %v2633_v14 = vadd.f32 %v857_v8, %v808_v18 }
 0x152   : > { %v906_v15 = vpop.f32.mrf.mxu2  ;;  %v967_v16 = vpop.f32.mrf.mxu0 }
 0x153   : > { %v955_v61 = vpop.f32.mrf.mxu3  ;;  %v1016_v62 = vpop.f32.mrf.mxu1 }
 0x154   : > { %v2635_v21 = vadd.f32 %v955_v61, %v906_v15  ;;  %v1017_v13 = vadd.f32 %v1016_v62, %v967_v16 }
 0x156   : > { %v1154_v27 = vmul.f32 %v1017_v13, %v2541_v26 }
 0x15a   : > { %v1065_v22 = vpop.f32.mrf.mxu2  ;;  %v969_v28 = vpop.f32.mrf.mxu0 }
 0x15b   : > { %v1114_v23 = vpop.f32.mrf.mxu3  ;;  %v1018_v29 = vpop.f32.mrf.mxu1 }
 0x15c   : > { %v1115_v30 = vadd.f32 %v1114_v23, %v1065_v22  ;;  %v1019_v5 = vadd.f32 %v1018_v29, %v969_v28 }
 0x15e   : > { %v1155_v6 = vmul.f32 %v1115_v30, %v2547_v31  ;;  %v1156_v35 = vmul.f32 %v1019_v5, %v2549_v32 }
 0x160   : > { %v1186_v36 = vadd.f32 %v1156_v35, %v1154_v27 }
 0x162   : > { %v1067_v41 = vpop.f32.mrf.mxu2  ;;  %v972_v42 = vpop.f32.mrf.mxu0 }
 0x163   : > { %v1116_v45 = vpop.f32.mrf.mxu3  ;;  %v1021_v46 = vpop.f32.mrf.mxu1 }
 0x164   : > { %v1117_v11 = vadd.f32 %v1116_v45, %v1067_v41  ;;  %v1022_v12 = vadd.f32 %v1021_v46, %v972_v42 }
 0x166   : > { %v1157_v49 = vmul.f32 %v1117_v11, %v2551_v37  ;;  %v1158_v26 = vmul.f32 %v1022_v12, %v2553_v38 }
 0x168   : > { %v1207_v50 = vadd.f32 %v1157_v49, %v1155_v6  ;;  %v1187_v59 = vadd.f32 %v1186_v36, %v1158_v26 }
 0x16a   : > { %v1070_v60 = vpop.f32.mrf.mxu2  ;;  %v974_v63 = vpop.f32.mrf.mxu0 }
 0x16b   : > { %v1119_v2 = vpop.f32.mrf.mxu3  ;;  %v1023_v17 = vpop.f32.mrf.mxu1 }
 0x16c   : > { %v1120_v31 = vadd.f32 %v1119_v2, %v1070_v60  ;;  %v1024_v18 = vadd.f32 %v1023_v17, %v974_v63 }
 0x16e   : > { %v1159_v32 = vmul.f32 %v1120_v31, %v2559_v43  ;;  %v1160_v7 = vmul.f32 %v1024_v18, %v2561_v44 }
 0x170   : > { %v1208_v8 = vadd.f32 %v1207_v50, %v1159_v32  ;;  %v1188_v15 = vadd.f32 %v1187_v59, %v1160_v7 }
 0x172   : > { %v1072_v16 = vpop.f32.mrf.mxu2  ;;  %v977_v61 = vpop.f32.mrf.mxu0 }
 0x173   : > { %v1121_v62 = vpop.f32.mrf.mxu3  ;;  %v1026_v37 = vpop.f32.mrf.mxu1 }
 0x174   : > { %v1122_v13 = vadd.f32 %v1121_v62, %v1072_v16  ;;  %v1027_v38 = vadd.f32 %v1026_v37, %v977_v61 }
 0x176   : > { %v1161_v27 = vmul.f32 %v1122_v13, %v2563_v51  ;;  %v1162_v22 = vmul.f32 %v1027_v38, %v2565_v52 }
 0x178   : > { %v1209_v28 = vadd.f32 %v1208_v8, %v1161_v27  ;;  %v1189_v23 = vadd.f32 %v1188_v15, %v1162_v22 }
 0x17a   : > { %v1075_v29 = vpop.f32.mrf.mxu2  ;;  %v979_v30 = vpop.f32.mrf.mxu0 }
 0x17b   : > { %v1124_v5 = vpop.f32.mrf.mxu3  ;;  %v1028_v43 = vpop.f32.mrf.mxu1 }
 0x17c   : > { %v1125_v6 = vadd.f32 %v1124_v5, %v1075_v29  ;;  %v1029_v44 = vadd.f32 %v1028_v43, %v979_v30 }
 0x17e   : > { %v1163_v35 = vmul.f32 %v1125_v6, %v2571_v57  ;;  %v1164_v36 = vmul.f32 %v1029_v44, %v2573_v58 }
 0x180   : > { %v1210_v41 = vadd.f32 %v1209_v28, %v1163_v35  ;;  %v1190_v42 = vadd.f32 %v1189_v23, %v1164_v36 }
 0x182   : > { %v1077_v45 = vpop.f32.mrf.mxu2  ;;  %v982_v46 = vpop.f32.mrf.mxu0 }
 0x183   : > { %v1126_v11 = vpop.f32.mrf.mxu3  ;;  %v1031_v51 = vpop.f32.mrf.mxu1 }
 0x184   : > { %v1127_v12 = vadd.f32 %v1126_v11, %v1077_v45  ;;  %v1032_v52 = vadd.f32 %v1031_v51, %v982_v46 }
 0x186   : > { %v1165_v49 = vmul.f32 %v1127_v12, %v2575_v3  ;;  %v1166_v26 = vmul.f32 %v1032_v52, %v2577_v4 }
 0x188   : > { %v1211_v50 = vadd.f32 %v1210_v41, %v1165_v49  ;;  %v1191_v59 = vadd.f32 %v1190_v42, %v1166_v26 }
 0x18a   : > { %v1080_v60 = vpop.f32.mrf.mxu2  ;;  %v984_v63 = vpop.f32.mrf.mxu0 }
 0x18b   : > { %v1129_v2 = vpop.f32.mrf.mxu3  ;;  %v1033_v57 = vpop.f32.mrf.mxu1 }
 0x18c   : > { %v1130_v17 = vadd.f32 %v1129_v2, %v1080_v60  ;;  %v1034_v58 = vadd.f32 %v1033_v57, %v984_v63 }
 0x18e   : > { %v1167_v31 = vmul.f32 %v1130_v17, %v2583_v9  ;;  %v1168_v18 = vmul.f32 %v1034_v58, %v2585_v10 }
 0x190   : > { %v1212_v32 = vadd.f32 %v1211_v50, %v1167_v31  ;;  %v1192_v7 = vadd.f32 %v1191_v59, %v1168_v18 }
 0x192   : > { %v1082_v8 = vpop.f32.mrf.mxu2  ;;  %v987_v15 = vpop.f32.mrf.mxu0 }
 0x193   : > { %v1131_v16 = vpop.f32.mrf.mxu3  ;;  %v1036_v3 = vpop.f32.mrf.mxu1 }
 0x194   : > { %v1132_v61 = vadd.f32 %v1131_v16, %v1082_v8  ;;  %v1037_v4 = vadd.f32 %v1036_v3, %v987_v15 }
 0x196   : > { %v1169_v62 = vmul.f32 %v1132_v61, %v2587_v19  ;;  %v1170_v37 = vmul.f32 %v1037_v4, %v2589_v20 }
 0x198   : > { %v1213_v13 = vadd.f32 %v1212_v32, %v1169_v62  ;;  %v1193_v38 = vadd.f32 %v1192_v7, %v1170_v37 }
 0x19a   : > { %v1085_v27 = vpop.f32.mrf.mxu2  ;;  %v989_v22 = vpop.f32.mrf.mxu0 }
 0x19b   : > { %v1134_v28 = vpop.f32.mrf.mxu3  ;;  %v1038_v9 = vpop.f32.mrf.mxu1 }
 0x19c   : > { %v1135_v23 = vadd.f32 %v1134_v28, %v1085_v27  ;;  %v1039_v10 = vadd.f32 %v1038_v9, %v989_v22 }
 0x19e   : > { %v1171_v29 = vmul.f32 %v1135_v23, %v2595_v24  ;;  %v1172_v30 = vmul.f32 %v1039_v10, %v2597_v25 }
 0x1a0   : > { %v1214_v5 = vadd.f32 %v1213_v13, %v1171_v29  ;;  %v1194_v43 = vadd.f32 %v1193_v38, %v1172_v30 }
 0x1a2   : > { %v1087_v6 = vpop.f32.mrf.mxu2  ;;  %v992_v44 = vpop.f32.mrf.mxu0 }
 0x1a3   : > { %v1136_v35 = vpop.f32.mrf.mxu3  ;;  %v1041_v19 = vpop.f32.mrf.mxu1 }
 0x1a4   : > { %v1137_v36 = vadd.f32 %v1136_v35, %v1087_v6  ;;  %v1042_v20 = vadd.f32 %v1041_v19, %v992_v44 }
 0x1a6   : > { %v1173_v41 = vmul.f32 %v1137_v36, %v2599_v33  ;;  %v1174_v42 = vmul.f32 %v1042_v20, %v2601_v34 }
 0x1a8   : > { %v1215_v45 = vadd.f32 %v1214_v5, %v1173_v41  ;;  %v1195_v46 = vadd.f32 %v1194_v43, %v1174_v42 }
 0x1aa   : > { %v1090_v11 = vpop.f32.mrf.mxu2  ;;  %v994_v51 = vpop.f32.mrf.mxu0 }
 0x1ab   : > { %v1139_v12 = vpop.f32.mrf.mxu3  ;;  %v1043_v24 = vpop.f32.mrf.mxu1 }
 0x1ac   : > { %v1140_v52 = vadd.f32 %v1139_v12, %v1090_v11  ;;  %v1044_v25 = vadd.f32 %v1043_v24, %v994_v51 }
 0x1ae   : > { %v1175_v49 = vmul.f32 %v1140_v52, %v2607_v39  ;;  %v1176_v26 = vmul.f32 %v1044_v25, %v2609_v40 }
 0x1b0   : > { %v1216_v50 = vadd.f32 %v1215_v45, %v1175_v49  ;;  %v1196_v59 = vadd.f32 %v1195_v46, %v1176_v26 }
 0x1b2   : > { %v1092_v60 = vpop.f32.mrf.mxu2  ;;  %v997_v63 = vpop.f32.mrf.mxu0 }
 0x1b3   : > { %v1141_v2 = vpop.f32.mrf.mxu3  ;;  %v1046_v33 = vpop.f32.mrf.mxu1 }
 0x1b4   : > { %v1142_v57 = vadd.f32 %v1141_v2, %v1092_v60  ;;  %v1047_v34 = vadd.f32 %v1046_v33, %v997_v63 }
 0x1b6   : > { %v1177_v17 = vmul.f32 %v1142_v57, %v2611_v47  ;;  %v1178_v58 = vmul.f32 %v1047_v34, %v2613_v48 }
 0x1b8   : > { %v1217_v31 = vadd.f32 %v1216_v50, %v1177_v17  ;;  %v1197_v18 = vadd.f32 %v1196_v59, %v1178_v58 }
 0x1ba   : > { %v1095_v32 = vpop.f32.mrf.mxu2  ;;  %v999_v7 = vpop.f32.mrf.mxu0 }
 0x1bb   : > { %v1144_v8 = vpop.f32.mrf.mxu3  ;;  %v1048_v39 = vpop.f32.mrf.mxu1 }
 0x1bc   : > { %v1145_v15 = vadd.f32 %v1144_v8, %v1095_v32  ;;  %v1049_v40 = vadd.f32 %v1048_v39, %v999_v7 }
 0x1be   : > { %v1179_v16 = vmul.f32 %v1145_v15, %v2619_v53  ;;  %v1180_v3 = vmul.f32 %v1049_v40, %v2621_v54 }
 0x1c0   : > { %v1218_v61 = vadd.f32 %v1217_v31, %v1179_v16  ;;  %v1198_v4 = vadd.f32 %v1197_v18, %v1180_v3 }
 0x1c2   : > { %v1097_v62 = vpop.f32.mrf.mxu2  ;;  %v1002_v37 = vpop.f32.mrf.mxu0 }
 0x1c3   : > { %v1146_v13 = vpop.f32.mrf.mxu3  ;;  %v1051_v47 = vpop.f32.mrf.mxu1 }
 0x1c4   : > { %v1147_v38 = vadd.f32 %v1146_v13, %v1097_v62  ;;  %v1052_v48 = vadd.f32 %v1051_v47, %v1002_v37 }
 0x1c6   : > { %v1181_v27 = vmul.f32 %v1147_v38, %v2623_v55  ;;  %v1182_v22 = vmul.f32 %v1052_v48, %v2625_v56 }
 0x1c8   : > { %v1219_v28 = vadd.f32 %v1218_v61, %v1181_v27  ;;  %v1199_v9 = vadd.f32 %v1198_v4, %v1182_v22 }
 0x1ca   : > { %v1100_v23 = vpop.f32.mrf.mxu2  ;;  %v1004_v10 = vpop.f32.mrf.mxu0 }
 0x1cb   : > { %v1149_v29 = vpop.f32.mrf.mxu3  ;;  %v1053_v53 = vpop.f32.mrf.mxu1 }
 0x1cc   : > { %v1150_v30 = vadd.f32 %v1149_v29, %v1100_v23  ;;  %v1054_v54 = vadd.f32 %v1053_v53, %v1004_v10 }
 0x1ce   : > { %v1183_v5 = vmul.f32 %v1150_v30, %v2631_v1  ;;  %v1184_v43 = vmul.f32 %v1054_v54, %v2633_v14 }
 0x1d0   : > { %v1220_v6 = vadd.f32 %v1219_v28, %v1183_v5  ;;  %v1200_v44 = vadd.f32 %v1199_v9, %v1184_v43 }
 0x1d2   : > { %v1201_v35 = vrot.slane %v1200_v44, 4  ;;  %v1102_v55 = vpop.f32.mrf.mxu2 }
 0x1d3   : > { %v1151_v19 = vpop.f32.mrf.mxu3 }
 0x1d4   : > { %v1152_v56 = vadd.f32 %v1151_v19, %v1102_v55  ;;  %v1202_v36 = vadd.f32 %v1201_v35, %v1200_v44 }
 0x1d6   : > { %v1185_v20 = vmul.f32 %v1152_v56, %v2635_v21  ;;  %v1203_v42 = vrot.slane %v1202_v36, 2 }
 0x1d8   : > { %v1221_v41 = vadd.f32 %v1220_v6, %v1185_v20  ;;  %v1204_v11 = vadd.f32 %v1203_v42, %v1202_v36 }
 0x1da   : > { %v1222_v45 = vrot.slane %v1221_v41, 4  ;;  %v1205_v14 = vrot.slane %v1204_v11, 1 }
 0x1dc   : > { %v1223_v46 = vadd.f32 %v1222_v45, %v1221_v41  ;;  %v1206_v21 = vadd.f32 %v1205_v14, %v1204_v11 }
 0x1de   : > { %v1224_v51 = vrot.slane %v1223_v46, 2 }
 0x1e0   : > { %v1225_v1 = vadd.f32 %v1224_v51, %v1223_v46 }
 0x1e2   : > { %v1226_v12 = vrot.slane %v1225_v1, 1 }
 0x1e4   : > { %v1227_v24 = vadd.f32 %v1226_v12, %v1225_v1 }
 0x1e6   : > { %v1230_v52 = vrot.slane %v1227_v24, 7 }
 0x1e8   : > { %v1232_v25 = vsel %vm1231_vm0, %v1206_v21, %v1230_v52 }
 0x1e9   : > { %1238 = vst.msk [vmem:[%s177_s14] sm:$0x3] %vm1236_vm1, %v1232_v25 }
 0x1ea   : > { %1832 = shalt.err (!%p1829_p9)
}
 0x1eb   : > { %1691 = dma.vmem_to_hbm [thread:$0]  (%p1956_p13), %s1253_s15, 32, %s1255_s18, %s1240_s16  }
 0x1ec PF: > { %s1266_s29 = sand.u32 1, %s1863_s9   ;;  %p2712_p10 = scmp.ge.s32.totalorder %s1875_s12, 2 }
 0x1ed   : > { %s1267_s4 = scalar_lea.sflag [#allocation4], %s1266_s29 }
 0x1ee   : > { %p1702_p11 = pnand %p2712_p10, %p1961_p4 }
 0x1f0   : > { %p1703_p0 = pneg %p1702_p11 }
 0x1f2   : > { %1858 = dma.done.wait (%p1703_p0), %s1267_s4, 32  }
 0x1f3   : > { %1860 = vsyncadd (%p1703_p0), %s1267_s4, 4294967264  ;;  %p16_p2 = scmp.ge.s32.totalorder %s1936_s23, 4   ;;  %s2713_s9 = smov %s1867_s10 }
 0x1f4   : > { %s2714_s10 = smov %s1871_s11  ;;  %s2715_s11 = smov %s1948_s26 }
 0x1f5   : > { %s2716_s12 = smov %s1936_s23  ;;  %18 = sbr.rel (!%p16_p2) target bundleno = 6 (0x6), region = 77 }
 0x1fa   :  { %1273 = vsyncpa [#allocation3], 1 }
 0x1fb   :  { %1275 = vsyncpa [#allocation3 + $0x1], 1 }
 0x1fc   :  { %1276 = vsyncpa [#allocation6], 1 }
 0x1fd   :  { %1277 = vsyncpa [#allocation4], 1 }
 0x1fe   :  { %1279 = vsyncpa [#allocation4 + $0x1], 1 }

// kernel: tpu_custom_call.1
= control target key start
LH: loop header
LB: loop body
LE: loop exit
PB: predicated region body
PF: predicated region fallthrough
CT: control target
= control target key end

     0   :  { %7 = vsyncpa [#allocation3], 0  ;;  %s2704_s0 = inlined_call_operand.hbm [shape: s32[1,1024], index: 0, kind: input, shape index: {}]   ;;  %s2705_s1 = inlined_call_operand.hbm [shape: bf16[128,256], index: 1, kind: input, shape index: {}]   ;;  %s2706_s2 = inlined_call_operand.hbm [shape: f32[1,512], index: 2, kind: output, shape index: {}]  }
   0x1   :  { %9 = vsyncpa [#allocation3 + $0x1], 0 }
   0x2   :  { %10 = vsyncpa [#allocation6], 0 }
   0x3   :  { %11 = vsyncpa [#allocation4], 0 }
   0x4   :  { %13 = vsyncpa [#allocation4 + $0x1], 0  ;;  %s1896_s9 = smov 0   ;;  %s1898_s10 = smov 0  }
   0x5   :  { %s1900_s11 = smov 0   ;;  %s1902_s12 = smov 0  }
   0x6 LB: > { %s108_s15 = sshll.u32 %s2705_s1, 4  ;;  %s1920_s16 = sadd.s32 4294967295, %s1875_s12   ;;  %s1875_s12 = sphi %s1902_s12, %s2716_s12   ;;  %s1871_s11 = sphi %s1900_s11, %s2715_s11   ;;  %s1867_s10 = sphi %s1898_s10, %s2714_s10   ;;  %s1863_s9 = sphi %s1896_s9, %s2713_s9   ;;  %s109_s15 = int_to_ptr.hbm [resolvable:$true] %s108_s15 }
   0x7   : > { %p1336_p0 = scmp.ge.s32.totalorder %s1875_s12, 1  ;;  %p40_p1 = scmp.eq.s32.totalorder %s1920_s16, 0 }
   0x8   : > { %p97_p2 = scmp.lt.s32.totalorder %s1875_s12, 3  ;;  %s1877_s18 = smov [#allocation5]  }
   0x9   : > { %s110_s19 = sshll.u32 %s1877_s18, 4  ;;  %s1878_s20 = smov 128   ;;  %s111_s19 = int_to_ptr.vmem [resolvable:$true] %s110_s19 }
   0xa   : > { %p1925_p3 = pnand %p1336_p0, %p97_p2  ;;  %s1879_s21 = smov 8  }
   0xb   : > { %s1335_s22 = sadd.s32 4294967294, %s1875_s12   ;;  %s1936_s23 = sadd.s32 1, %s1875_s12  }
   0xc   : > { %p1693_p4 = pneg %p1925_p3  ;;  %s26_s24 = sadd.s32 1, %s1871_s11 }
   0xd   : > { %s23_s25 = ssub.s32 %s1875_s12, %s1936_s23  ;;  %p33_p7 = scmp.ne.s32.totalorder %s1871_s11, %s1867_s10 }
   0xe   : > { %p1694_p6 = pnand %p1693_p4, %p40_p1  ;;  %p24_p8 = scmp.eq.s32.totalorder %s23_s25, 0 }
   0xf   : > { %p34_p9 = scmp.eq.s32.totalorder %s1875_s12, 0  ;;  %p39_p10 = scmp.ne.s32.totalorder %s1867_s10, %s1863_s9 }
  0x10   : > { %1696 = dma.hbm_to_vmem [thread:$0]  (!%p1694_p6), %s109_s15, 2048, %s111_s19, [#allocation6], %s1878_s20, %s1878_s20, %s1879_s21  }
  0x11   : > { %p84_p11 = scmp.eq.s32.totalorder %s1920_s16, 1  ;;  %p1952_p12 = por %p40_p1, %p39_p10 }
  0x12   : > { %s1948_s26 = scalar_select %p24_p8, %s1871_s11, %s26_s24  }
  0x13   : > { %p1956_p13 = por %p84_p11, %p33_p7  ;;  %p90_p0 = scmp.eq.s32.totalorder %s1335_s22, 1 }
  0x14   : > { %p35_p2 = por %p34_p9, %p33_p7  ;;  %s124_s29 = sand.u32 1, %s1871_s11  }
  0x15   : > { %p1961_p4 = por %p90_p0, %p39_p10  ;;  %p1706_p6 = scmp.lt.s32.totalorder %s1875_s12, 2 }
  0x16   : > { %s1339_s3 = sshll.u32 %s124_s29, 2  ;;  %s1340_s4 = sshll.u32 %s1875_s12, 2 }
  0x17   : > { %s132_s7 = scalar_lea.hbm %s2704_s0, %s1340_s4  ;;  %s128_s13 = scalar_lea.vmem [#allocation2], %s1339_s3 }
  0x18   : > { %s134_s8 = sshll.u32 %s132_s7, 4  ;;  %s136_s14 = sshll.u32 %s128_s13, 4  ;;  %s135_s8 = int_to_ptr.hbm [resolvable:$true] %s134_s8  ;;  %s137_s14 = int_to_ptr.vmem [resolvable:$true] %s136_s14 }
  0x19   : > { %p1970_p8 = pnand %p1706_p6, %p35_p2  ;;  %s125_s18 = scalar_lea.sflag [#allocation3], %s124_s29 }
  0x1a   : > { %s1775_s19 = sshra.s32 %s135_s8, 4  ;;  %s1782_s24 = scalar_lea.hbm %s2704_s0, 8  ;;  %s1776_s19 = int_to_ptr.hbm [resolvable:$true] %s1775_s19 }
  0x1b   : > { %s1777_s20 = scalar_lea.hbm %s1776_s19, 4  ;;  %p1779_p9 = pneg %p1970_p8 }
  0x1c   : > { %p1778_p7 = scmp.ne.s32.totalorder %s1776_s19, %s1777_s20  ;;  %p1783_p0 = scmp.lt.s32.totalorder %s1776_s19, %s2704_s0 }
  0x1d   : > { %p1784_p2 = scmp.lt.s32.totalorder %s1782_s24, %s1777_s20 }
  0x1e   : > { %p1780_p10 = pnand %p1779_p9, %p1778_p7 }
  0x1f   : > { %p1785_p6 = por %p1784_p2, %p1783_p0 }
  0x20   : > { %p1781_p11 = pneg %p1780_p10 }
  0x22   : > { %p1786_p5 = pnand %p1785_p6, %p1781_p11 }
  0x24   : > { %1789 = shalt.err (!%p1786_p5)
}
  0x25   : > { %1700 = dma.hbm_to_vmem [thread:$0]  (!%p1970_p8), %s135_s8, 64, %s137_s14, %s125_s18  }
  0x26   : > { %145 = sbr.rel (%p1925_p3) target bundleno = 492 (0x1ec), region = 28  ;;  %s1987_s29 = sand.u32 (!%p1925_p3), 1, %s1867_s10  }
  0x27   : > { %s1342_s4 = sshll.u32 (!%p1925_p3), %s1987_s29, 2  ;;  %s148_s5 = scalar_lea.sflag (!%p1925_p3), [#allocation3], %s1987_s29 }
  0x28   : > { %s151_s6 = scalar_lea.vmem (!%p1925_p3), [#allocation2], %s1342_s4 }
  0x2b   : > { %1850 = dma.done.wait (%p1952_p12), %s148_s5, 64  }
  0x2c   : > { %1852 = vsyncadd (%p1952_p12), %s148_s5, 4294967232 }
  0x2d   : > { %1854 = dma.done.wait (%p40_p1), [#allocation6], 2048  }
  0x2e   : > { %1856 = vsyncadd (%p40_p1), [#allocation6], 4294965248  ;;  %v181_v0 = vlaneseq  ;;  %v2014_v6 = vld [vmem:[%s151_s6] sm:$0xf]  ;;  %v1880_v13 = vmov 1.0|1.0  }
  0x2f   : > { %v2017_v7 = vperm.slane %v2014_v6, 0  ;;  %v2020_v8 = vperm.slane %v2014_v6, 1  ;;  %v1475_v37 = vld [vmem:[#allocation5] sm:$0xf]  ;;  %v1670_v38 = vld [vmem:[#allocation5 + $0x4] sm:$0xf0] }
  0x30   : > { %v2000_v1 = vshrl.u32 %v181_v0, 7  ;;  %v2278_v39 = vperm.slane %v2014_v6, 3  ;;  %v1669_v40 = vld [vmem:[#allocation5 + $0x4] sm:$0xf]  ;;  %v1477_v41 = vld [vmem:[#allocation5 + $0x8] sm:$0xf0]  ;;  %v2310_v43 = vor.u32 %v1670_v38, %v1475_v37 }
  0x31   : > { %v2297_v42 = vperm.slane %v2014_v6, 2  ;;  %v2316_v44 = vor.u32 %v1669_v40, %v1477_v41  ;;  %v1483_v45 = vld [vmem:[#allocation5 + $0x10] sm:$0xf]  ;;  %v1672_v46 = vld [vmem:[#allocation5 + $0x14] sm:$0xf0]  ;;  %s1344_s17 = sshll.u32 %s1987_s29, 1 }
  0x32   : > { %v2003_v2 = vadd.s32 112, %v2000_v1  ;;  %v2006_v3 = vadd.s32 120, %v2000_v1  ;;  %v2009_v4 = vadd.s32 240, %v2000_v1  ;;  %v2012_v5 = vadd.s32 248, %v2000_v1  ;;  %v1671_v47 = vld [vmem:[#allocation5 + $0x14] sm:$0xf] }
  0x33   : > { %v2023_v9 = vadd.s32 96, %v2000_v1  ;;  %v2026_v10 = vadd.s32 104, %v2000_v1  ;;  %v2029_v11 = vadd.s32 224, %v2000_v1  ;;  %v2032_v12 = vadd.s32 232, %v2000_v1  ;;  %v1485_v48 = vld [vmem:[#allocation5 + $0x18] sm:$0xf0] }
  0x34   : > { %vm274_vm0 = vcmp.eq.s32.totalorder %v2003_v2, %v2017_v7  ;;  %vm278_vm1 = vcmp.eq.s32.totalorder %v2006_v3, %v2017_v7  ;;  %vm338_vm2 = vcmp.eq.s32.totalorder %v2009_v4, %v2017_v7  ;;  %vm342_vm3 = vcmp.eq.s32.totalorder %v2012_v5, %v2017_v7  ;;  %v1491_v51 = vld [vmem:[#allocation5 + $0x20] sm:$0xf]  ;;  %v1674_v52 = vld [vmem:[#allocation5 + $0x24] sm:$0xf0]  ;;  %v1673_v53 = vld [vmem:[#allocation5 + $0x24] sm:$0xf] }
  0x35   : > { %vm1537_vm4 = vmpackc.low %vm278_vm1, %vm274_vm0  ;;  %vm275_vm5 = vcmp.eq.s32.totalorder %v2003_v2, %v2020_v8  ;;  %vm279_vm6 = vcmp.eq.s32.totalorder %v2006_v3, %v2020_v8  ;;  %vm339_vm7 = vcmp.eq.s32.totalorder %v2009_v4, %v2020_v8  ;;  %vm343_vm8 = vcmp.eq.s32.totalorder %v2012_v5, %v2020_v8  ;;  %v1493_v54 = vld [vmem:[#allocation5 + $0x28] sm:$0xf0]  ;;  %v1499_v57 = vld [vmem:[#allocation5 + $0x30] sm:$0xf]  ;;  %s1666_s27 = sshll.u32 %s1920_s16, 1  ;;  %s177_s14 = scalar_lea.vmem [#allocation7], %s1344_s17 }
  0x36   : > { %1538 = vmatpush.bf16.msk.msra.mxu0 %vm1537_vm4, %v1880_v13  ;;  %vm1553_vm9 = vmpackc.low %vm342_vm3, %vm338_vm2  ;;  %vm266_vm10 = vcmp.eq.s32.totalorder %v2023_v9, %v2017_v7  ;;  %vm270_vm11 = vcmp.eq.s32.totalorder %v2026_v10, %v2017_v7  ;;  %v2056_v14 = vadd.s32 80, %v2000_v1  ;;  %v2059_v15 = vadd.s32 88, %v2000_v1  ;;  %v1676_v58 = vld [vmem:[#allocation5 + $0x34] sm:$0xf0]  ;;  %v1675_v59 = vld [vmem:[#allocation5 + $0x34] sm:$0xf]  ;;  %s1250_s13 = scalar_lea.hbm %s2706_s2, %s1666_s27 }
  0x37   : > { %1554 = vmatpush.bf16.msk.msra.mxu1 %vm1553_vm9, %v1880_v13  ;;  %vm1569_vm12 = vmpackc.low %vm279_vm6, %vm275_vm5  ;;  %vm330_vm13 = vcmp.eq.s32.totalorder %v2029_v11, %v2017_v7  ;;  %vm334_vm14 = vcmp.eq.s32.totalorder %v2032_v12, %v2017_v7  ;;  %v2067_v16 = vadd.s32 208, %v2000_v1  ;;  %v2070_v17 = vadd.s32 216, %v2000_v1  ;;  %v1501_v60 = vld [vmem:[#allocation5 + $0x38] sm:$0xf0]  ;;  %v1507_v63 = vld [vmem:[#allocation5 + $0x40] sm:$0xf] }
  0x38   : > { %1570 = vmatpush.bf16.msk.msra.mxu2 %vm1569_vm12, %v1880_v13  ;;  %vm1585_vm15 = vmpackc.low %vm343_vm8, %vm339_vm7  ;;  %vm267_vm0 = vcmp.eq.s32.totalorder %v2023_v9, %v2020_v8  ;;  %vm271_vm1 = vcmp.eq.s32.totalorder %v2026_v10, %v2020_v8  ;;  %vm331_vm3 = vcmp.eq.s32.totalorder %v2029_v11, %v2020_v8  ;;  %vm335_vm4 = vcmp.eq.s32.totalorder %v2032_v12, %v2020_v8  ;;  %s1252_s15 = sshll.u32 %s177_s14, 4  ;;  %s1254_s18 = sshll.u32 %s1250_s13, 4  ;;  %s1253_s15 = int_to_ptr.vmem [resolvable:$true] %s1252_s15  ;;  %s1255_s18 = int_to_ptr.hbm [resolvable:$true] %s1254_s18 }
  0x39   : > { %1586 = vmatpush.bf16.msk.msra.mxu3 %vm1585_vm15, %v1880_v13  ;;  %vm1539_vm2 = vmpackc.low %vm270_vm11, %vm266_vm10  ;;  %vm258_vm6 = vcmp.eq.s32.totalorder %v2056_v14, %v2017_v7  ;;  %vm262_vm7 = vcmp.eq.s32.totalorder %v2059_v15, %v2017_v7  ;;  %v2097_v18 = vadd.s32 64, %v2000_v1  ;;  %v2100_v19 = vadd.s32 72, %v2000_v1  ;;  %s1240_s16 = scalar_lea.sflag [#allocation4], %s1987_s29  ;;  %s1819_s19 = sshra.s32 %s1255_s18, 4  ;;  %s1820_s19 = int_to_ptr.hbm [resolvable:$true] %s1819_s19 }
  0x3a   : > { %1540 = vmatpush.bf16.msk.msra.mxu0 %vm1539_vm2, %v1880_v13  ;;  %vm1555_vm5 = vmpackc.low %vm334_vm14, %vm330_vm13  ;;  %vm322_vm9 = vcmp.eq.s32.totalorder %v2067_v16, %v2017_v7  ;;  %vm326_vm10 = vcmp.eq.s32.totalorder %v2070_v17, %v2017_v7  ;;  %v2108_v20 = vadd.s32 192, %v2000_v1  ;;  %v2111_v21 = vadd.s32 200, %v2000_v1  ;;  %s1821_s20 = scalar_lea.hbm %s1820_s19, 2  ;;  %s1825_s24 = scalar_lea.hbm %s2706_s2, 4 }
  0x3b   : > { %1556 = vmatpush.bf16.msk.msra.mxu1 %vm1555_vm5, %v1880_v13  ;;  %vm1571_vm8 = vmpackc.low %vm271_vm1, %vm267_vm0  ;;  %vm259_vm12 = vcmp.eq.s32.totalorder %v2056_v14, %v2020_v8  ;;  %vm263_vm13 = vcmp.eq.s32.totalorder %v2059_v15, %v2020_v8  ;;  %vm323_vm15 = vcmp.eq.s32.totalorder %v2067_v16, %v2020_v8  ;;  %vm327_vm0 = vcmp.eq.s32.totalorder %v2070_v17, %v2020_v8  ;;  %p1822_p1 = scmp.ne.s32.totalorder %s1820_s19, %s1821_s20  ;;  %p1826_p12 = scmp.lt.s32.totalorder %s1820_s19, %s2706_s2 }
  0x3c   : > { %1572 = vmatpush.bf16.msk.msra.mxu2 %vm1571_vm8, %v1880_v13  ;;  %vm1587_vm11 = vmpackc.low %vm335_vm4, %vm331_vm3  ;;  %vm250_vm2 = vcmp.eq.s32.totalorder %v2097_v18, %v2017_v7  ;;  %vm254_vm3 = vcmp.eq.s32.totalorder %v2100_v19, %v2017_v7  ;;  %v2135_v22 = vadd.s32 48, %v2000_v1  ;;  %v2138_v23 = vadd.s32 56, %v2000_v1  ;;  %p1827_p8 = scmp.lt.s32.totalorder %s1825_s24, %s1821_s20 }
  0x3d   : > { %1588 = vmatpush.bf16.msk.msra.mxu3 %vm1587_vm11, %v1880_v13  ;;  %vm1541_vm14 = vmpackc.low %vm262_vm7, %vm258_vm6  ;;  %vm314_vm5 = vcmp.eq.s32.totalorder %v2108_v20, %v2017_v7  ;;  %vm318_vm6 = vcmp.eq.s32.totalorder %v2111_v21, %v2017_v7  ;;  %v2146_v24 = vadd.s32 176, %v2000_v1  ;;  %v2149_v25 = vadd.s32 184, %v2000_v1  ;;  %p1823_p3 = pnand %p1822_p1, %p1956_p13 }
  0x3e   : > { %1542 = vmatpush.bf16.msk.msra.mxu0 %vm1541_vm14, %v1880_v13  ;;  %vm1557_vm1 = vmpackc.low %vm326_vm10, %vm322_vm9  ;;  %vm251_vm8 = vcmp.eq.s32.totalorder %v2097_v18, %v2020_v8  ;;  %vm255_vm9 = vcmp.eq.s32.totalorder %v2100_v19, %v2020_v8  ;;  %vm315_vm11 = vcmp.eq.s32.totalorder %v2108_v20, %v2020_v8  ;;  %vm242_vm14 = vcmp.eq.s32.totalorder %v2135_v22, %v2017_v7  ;;  %p1828_p7 = por %p1827_p8, %p1826_p12 }
  0x3f   : > { %1558 = vmatpush.bf16.msk.msra.mxu1 %vm1557_vm1, %v1880_v13  ;;  %vm1573_vm4 = vmpackc.low %vm263_vm13, %vm259_vm12  ;;  %vm319_vm12 = vcmp.eq.s32.totalorder %v2111_v21, %v2020_v8  ;;  %v2173_v26 = vadd.s32 32, %v2000_v1  ;;  %v2176_v27 = vadd.s32 40, %v2000_v1  ;;  %vm306_vm1 = vcmp.eq.s32.totalorder %v2146_v24, %v2017_v7  ;;  %p1824_p5 = pneg %p1823_p3 }
  0x40   : > { %1574 = vmatpush.bf16.msk.msra.mxu2 %vm1573_vm4, %v1880_v13  ;;  %vm1589_vm7 = vmpackc.low %vm327_vm0, %vm323_vm15  ;;  %vm246_vm15 = vcmp.eq.s32.totalorder %v2138_v23, %v2017_v7  ;;  %v2184_v28 = vadd.s32 160, %v2000_v1  ;;  %v2187_v29 = vadd.s32 168, %v2000_v1  ;;  %vm243_vm4 = vcmp.eq.s32.totalorder %v2135_v22, %v2020_v8 }
  0x41   : > { %1590 = vmatpush.bf16.msk.msra.mxu3 %vm1589_vm7, %v1880_v13  ;;  %vm1543_vm10 = vmpackc.low %vm254_vm3, %vm250_vm2  ;;  %vm310_vm2 = vcmp.eq.s32.totalorder %v2149_v25, %v2017_v7  ;;  %vm307_vm7 = vcmp.eq.s32.totalorder %v2146_v24, %v2020_v8  ;;  %v2211_v30 = vadd.s32 16, %v2000_v1  ;;  %v2214_v31 = vadd.s32 24, %v2000_v1  ;;  %p1829_p9 = pnand %p1828_p7, %p1824_p5 }
  0x42   : > { %1544 = vmatpush.bf16.msk.msra.mxu0 %vm1543_vm10, %v1880_v13  ;;  %vm1559_vm13 = vmpackc.low %vm318_vm6, %vm314_vm5  ;;  %vm247_vm5 = vcmp.eq.s32.totalorder %v2138_v23, %v2020_v8  ;;  %vm234_vm10 = vcmp.eq.s32.totalorder %v2173_v26, %v2017_v7  ;;  %v2222_v32 = vadd.s32 144, %v2000_v1  ;;  %v2225_v33 = vadd.s32 152, %v2000_v1 }
  0x43   : > { %1560 = vmatpush.bf16.msk.msra.mxu1 %vm1559_vm13, %v1880_v13  ;;  %vm1575_vm0 = vmpackc.low %vm255_vm9, %vm251_vm8  ;;  %vm311_vm8 = vcmp.eq.s32.totalorder %v2149_v25, %v2020_v8  ;;  %vm298_vm13 = vcmp.eq.s32.totalorder %v2184_v28, %v2017_v7  ;;  %v2249_v34 = vadd.s32 8, %v2000_v1  ;;  %v2257_v35 = vadd.s32 128, %v2000_v1 }
  0x44   : > { %1576 = vmatpush.bf16.msk.msra.mxu2 %vm1575_vm0, %v1880_v13  ;;  %vm1591_vm3 = vmpackc.low %vm319_vm12, %vm315_vm11  ;;  %vm238_vm11 = vcmp.eq.s32.totalorder %v2176_v27, %v2017_v7  ;;  %vm235_vm0 = vcmp.eq.s32.totalorder %v2173_v26, %v2020_v8  ;;  %v2260_v36 = vadd.s32 136, %v2000_v1  ;;  %v2384_v49 = vor.u32 %v1672_v46, %v1483_v45 }
  0x45   : > { %1592 = vmatpush.bf16.msk.msra.mxu3 %vm1591_vm3, %v1880_v13  ;;  %vm1545_vm6 = vmpackc.low %vm246_vm15, %vm242_vm14  ;;  %vm302_vm14 = vcmp.eq.s32.totalorder %v2187_v29, %v2017_v7  ;;  %vm299_vm3 = vcmp.eq.s32.totalorder %v2184_v28, %v2020_v8  ;;  %v2387_v50 = vor.u32 %v1671_v47, %v1485_v48  ;;  %v2413_v55 = vor.u32 %v1674_v52, %v1491_v51 }
  0x46   : > { %1546 = vmatpush.bf16.msk.msra.mxu0 %vm1545_vm6, %v1880_v13  ;;  %vm1561_vm9 = vmpackc.low %vm310_vm2, %vm306_vm1  ;;  %vm239_vm1 = vcmp.eq.s32.totalorder %v2176_v27, %v2020_v8  ;;  %vm226_vm6 = vcmp.eq.s32.totalorder %v2211_v30, %v2017_v7  ;;  %v2415_v56 = vor.u32 %v1673_v53, %v1493_v54  ;;  %v2441_v61 = vor.u32 %v1676_v58, %v1499_v57 }
  0x47   : > { %1562 = vmatpush.bf16.msk.msra.mxu1 %vm1561_vm9, %v1880_v13  ;;  %vm1577_vm12 = vmpackc.low %vm247_vm5, %vm243_vm4  ;;  %vm303_vm4 = vcmp.eq.s32.totalorder %v2187_v29, %v2020_v8  ;;  %vm290_vm9 = vcmp.eq.s32.totalorder %v2222_v32, %v2017_v7  ;;  %v2443_v62 = vor.u32 %v1675_v59, %v1501_v60 }
  0x48   : > { %1578 = vmatpush.bf16.msk.msra.mxu2 %vm1577_vm12, %v1880_v13  ;;  %vm1593_vm15 = vmpackc.low %vm311_vm8, %vm307_vm7  ;;  %vm230_vm7 = vcmp.eq.s32.totalorder %v2214_v31, %v2017_v7  ;;  %vm227_vm12 = vcmp.eq.s32.totalorder %v2211_v30, %v2020_v8 }
  0x49   : > { %1594 = vmatpush.bf16.msk.msra.mxu3 %vm1593_vm15, %v1880_v13  ;;  %vm1547_vm2 = vmpackc.low %vm238_vm11, %vm234_vm10  ;;  %vm294_vm10 = vcmp.eq.s32.totalorder %v2225_v33, %v2017_v7  ;;  %vm291_vm15 = vcmp.eq.s32.totalorder %v2222_v32, %v2020_v8 }
  0x4a   : > { %1548 = vmatpush.bf16.msk.msra.mxu0 %vm1547_vm2, %v1880_v13  ;;  %vm1563_vm5 = vmpackc.low %vm302_vm14, %vm298_vm13  ;;  %vm231_vm13 = vcmp.eq.s32.totalorder %v2214_v31, %v2020_v8  ;;  %vm218_vm2 = vcmp.eq.s32.totalorder %v2000_v1, %v2017_v7 }
  0x4b   : > { %1564 = vmatpush.bf16.msk.msra.mxu1 %vm1563_vm5, %v1880_v13  ;;  %vm1579_vm8 = vmpackc.low %vm239_vm1, %vm235_vm0  ;;  %vm295_vm0 = vcmp.eq.s32.totalorder %v2225_v33, %v2020_v8  ;;  %vm282_vm5 = vcmp.eq.s32.totalorder %v2257_v35, %v2017_v7 }
  0x4c   : > { %1580 = vmatpush.bf16.msk.msra.mxu2 %vm1579_vm8, %v1880_v13  ;;  %vm1595_vm11 = vmpackc.low %vm303_vm4, %vm299_vm3  ;;  %vm222_vm3 = vcmp.eq.s32.totalorder %v2249_v34, %v2017_v7  ;;  %vm219_vm8 = vcmp.eq.s32.totalorder %v2000_v1, %v2020_v8 }
  0x4d   : > { %1596 = vmatpush.bf16.msk.msra.mxu3 %vm1595_vm11, %v1880_v13  ;;  %vm1549_vm14 = vmpackc.low %vm230_vm7, %vm226_vm6  ;;  %vm286_vm6 = vcmp.eq.s32.totalorder %v2260_v36, %v2017_v7  ;;  %vm283_vm11 = vcmp.eq.s32.totalorder %v2257_v35, %v2020_v8  ;;  %v1515_v7 = vld [vmem:[#allocation5 + $0x50] sm:$0xf] }
  0x4e   : > { %1550 = vmatpush.bf16.msk.msra.mxu0 %vm1549_vm14, %v1880_v13  ;;  %vm1565_vm1 = vmpackc.low %vm294_vm10, %vm290_vm9  ;;  %vm223_vm9 = vcmp.eq.s32.totalorder %v2249_v34, %v2020_v8  ;;  %vm277_vm14 = vcmp.eq.s32.totalorder %v2003_v2, %v2278_v39 }
  0x4f   : > { %1566 = vmatpush.bf16.msk.msra.mxu1 %vm1565_vm1, %v1880_v13  ;;  %vm1581_vm4 = vmpackc.low %vm231_vm13, %vm227_vm12  ;;  %vm287_vm12 = vcmp.eq.s32.totalorder %v2260_v36, %v2020_v8  ;;  %vm341_vm1 = vcmp.eq.s32.totalorder %v2009_v4, %v2278_v39  ;;  %v1680_v8 = vld [vmem:[#allocation5 + $0x54] sm:$0xf0] }
  0x50   : > { %1582 = vmatpush.bf16.msk.msra.mxu2 %vm1581_vm4, %v1880_v13  ;;  %vm1597_vm7 = vmpackc.low %vm295_vm0, %vm291_vm15  ;;  %vm281_vm15 = vcmp.eq.s32.totalorder %v2006_v3, %v2278_v39  ;;  %vm276_vm4 = vcmp.eq.s32.totalorder %v2003_v2, %v2297_v42  ;;  %v1678_v2 = vld [vmem:[#allocation5 + $0x44] sm:$0xf0] }
  0x51   : > { %1598 = vmatpush.bf16.msk.msra.mxu3 %vm1597_vm7, %v1880_v13  ;;  %vm1551_vm10 = vmpackc.low %vm222_vm3, %vm218_vm2  ;;  %vm345_vm2 = vcmp.eq.s32.totalorder %v2012_v5, %v2278_v39  ;;  %vm340_vm7 = vcmp.eq.s32.totalorder %v2009_v4, %v2297_v42  ;;  %v1509_v4 = vld [vmem:[#allocation5 + $0x48] sm:$0xf0] }
  0x52   : > { %1552 = vmatpush.bf16.msk.msra.mxu0 %vm1551_vm10, %v1880_v13  ;;  %vm1567_vm13 = vmpackc.low %vm286_vm6, %vm282_vm5  ;;  %vm280_vm5 = vcmp.eq.s32.totalorder %v2006_v3, %v2297_v42  ;;  %vm269_vm10 = vcmp.eq.s32.totalorder %v2023_v9, %v2278_v39  ;;  %v1677_v3 = vld [vmem:[#allocation5 + $0x44] sm:$0xf] }
  0x53   : > { %1568 = vmatpush.bf16.msk.msra.mxu1 %vm1567_vm13, %v1880_v13  ;;  %vm1583_vm0 = vmpackc.low %vm223_vm9, %vm219_vm8  ;;  %vm344_vm8 = vcmp.eq.s32.totalorder %v2012_v5, %v2297_v42  ;;  %vm333_vm13 = vcmp.eq.s32.totalorder %v2029_v11, %v2278_v39  ;;  %v2469_v5 = vor.u32 %v1678_v2, %v1507_v63  ;;  %v2471_v6 = vor.u32 %v1677_v3, %v1509_v4 }
  0x54   : > { %1584 = vmatpush.bf16.msk.msra.mxu2 %vm1583_vm0, %v1880_v13  ;;  %vm1599_vm3 = vmpackc.low %vm287_vm12, %vm283_vm11  ;;  %vm273_vm11 = vcmp.eq.s32.totalorder %v2026_v10, %v2278_v39  ;;  %vm268_vm0 = vcmp.eq.s32.totalorder %v2023_v9, %v2297_v42  ;;  %v1679_v9 = vld [vmem:[#allocation5 + $0x54] sm:$0xf] }
  0x55   : > { %1600 = vmatpush.bf16.msk.msra.mxu3 %vm1599_vm3, %v1880_v13  ;;  %770 = vmatmul.bf16.vlgmr.msra.gmra.mxu0 %v2310_v43  ;;  %vm1633_vm6 = vmpackc.low %vm281_vm15, %vm277_vm14  ;;  %vm337_vm14 = vcmp.eq.s32.totalorder %v2032_v12, %v2278_v39  ;;  %vm332_vm3 = vcmp.eq.s32.totalorder %v2029_v11, %v2297_v42  ;;  %v2497_v11 = vor.u32 %v1680_v8, %v1515_v7 }
  0x56   : > { %819 = vmatmul.bf16.vlgmr.msra.gmra.mxu1 %v2316_v44  ;;  %vm1649_vm9 = vmpackc.low %vm345_vm2, %vm341_vm1  ;;  %vm272_vm1 = vcmp.eq.s32.totalorder %v2026_v10, %v2297_v42  ;;  %v1517_v10 = vld [vmem:[#allocation5 + $0x58] sm:$0xf0] }
  0x57   : > { %868 = vmatmul.bf16.vlgmr.msra.gmra.mxu2 %v2310_v43  ;;  %vm1601_vm12 = vmpackc.low %vm280_vm5, %vm276_vm4  ;;  %vm336_vm4 = vcmp.eq.s32.totalorder %v2032_v12, %v2297_v42  ;;  %v2499_v12 = vor.u32 %v1679_v9, %v1517_v10 }
  0x58   : > { %1634 = vmatpush.bf16.msk.msrb.mxu2 %vm1633_vm6, %v1880_v13  ;;  %917 = vmatmul.bf16.vlgmr.msra.gmra.mxu3 %v2316_v44  ;;  %vm1617_vm15 = vmpackc.low %vm344_vm8, %vm340_vm7  ;;  %vm261_vm6 = vcmp.eq.s32.totalorder %v2056_v14, %v2278_v39  ;;  %vm265_vm7 = vcmp.eq.s32.totalorder %v2059_v15, %v2278_v39 }
  0x59   : > { %1650 = vmatpush.bf16.msk.msrb.mxu3 %vm1649_vm9, %v1880_v13  ;;  %1602 = vmatpush.bf16.msk.msrb.mxu0 %vm1601_vm12, %v1880_v13  ;;  %vm1635_vm2 = vmpackc.low %vm273_vm11, %vm269_vm10  ;;  %vm325_vm9 = vcmp.eq.s32.totalorder %v2067_v16, %v2278_v39  ;;  %vm329_vm10 = vcmp.eq.s32.totalorder %v2070_v17, %v2278_v39  ;;  %vm260_vm12 = vcmp.eq.s32.totalorder %v2056_v14, %v2297_v42  ;;  %v1682_v14 = vld [vmem:[#allocation5 + $0x64] sm:$0xf0] }
  0x5a   : > { %1618 = vmatpush.bf16.msk.msrb.mxu1 %vm1617_vm15, %v1880_v13  ;;  %vm1651_vm5 = vmpackc.low %vm337_vm14, %vm333_vm13  ;;  %vm264_vm13 = vcmp.eq.s32.totalorder %v2059_v15, %v2297_v42  ;;  %vm324_vm15 = vcmp.eq.s32.totalorder %v2067_v16, %v2297_v42  ;;  %v1681_v15 = vld [vmem:[#allocation5 + $0x64] sm:$0xf]  ;;  %v1525_v16 = vld [vmem:[#allocation5 + $0x68] sm:$0xf0] }
  0x5b   : > { %vm1603_vm8 = vmpackc.low %vm272_vm1, %vm268_vm0  ;;  %vm328_vm0 = vcmp.eq.s32.totalorder %v2070_v17, %v2297_v42 }
  0x5c   : > { %1636 = vmatpush.bf16.msk.msrb.mxu2 %vm1635_vm2, %v1880_v13  ;;  %vm1619_vm11 = vmpackc.low %vm336_vm4, %vm332_vm3  ;;  %vm253_vm4 = vcmp.eq.s32.totalorder %v2097_v18, %v2278_v39 }
  0x5d   : > { %1652 = vmatpush.bf16.msk.msrb.mxu3 %vm1651_vm5, %v1880_v13  ;;  %1604 = vmatpush.bf16.msk.msrb.mxu0 %vm1603_vm8, %v1880_v13  ;;  %vm1637_vm14 = vmpackc.low %vm265_vm7, %vm261_vm6  ;;  %vm257_vm5 = vcmp.eq.s32.totalorder %v2100_v19, %v2278_v39  ;;  %vm317_vm6 = vcmp.eq.s32.totalorder %v2108_v20, %v2278_v39  ;;  %vm321_vm7 = vcmp.eq.s32.totalorder %v2111_v21, %v2278_v39 }
  0x5e   : > { %1620 = vmatpush.bf16.msk.msrb.mxu1 %vm1619_vm11, %v1880_v13  ;;  %vm1653_vm1 = vmpackc.low %vm329_vm10, %vm325_vm9  ;;  %vm252_vm9 = vcmp.eq.s32.totalorder %v2097_v18, %v2297_v42  ;;  %vm256_vm10 = vcmp.eq.s32.totalorder %v2100_v19, %v2297_v42  ;;  %vm316_vm11 = vcmp.eq.s32.totalorder %v2108_v20, %v2297_v42  ;;  %v2527_v18 = vor.u32 %v1681_v15, %v1525_v16  ;;  %v1531_v19 = vld [vmem:[#allocation5 + $0x70] sm:$0xf]  ;;  %v1684_v20 = vld [vmem:[#allocation5 + $0x74] sm:$0xf0] }
  0x5f   : > { %vm1605_vm2 = vmpackc.low %vm264_vm13, %vm260_vm12  ;;  %vm320_vm12 = vcmp.eq.s32.totalorder %v2111_v21, %v2297_v42  ;;  %v1683_v21 = vld [vmem:[#allocation5 + $0x74] sm:$0xf] }
  0x60   : > { %1638 = vmatpush.bf16.msk.msrb.mxu2 %vm1637_vm14, %v1880_v13  ;;  %vm1621_vm3 = vmpackc.low %vm328_vm0, %vm324_vm15  ;;  %vm245_vm0 = vcmp.eq.s32.totalorder %v2135_v22, %v2278_v39 }
  0x61   : > { %1654 = vmatpush.bf16.msk.msrb.mxu3 %vm1653_vm1, %v1880_v13  ;;  %1606 = vmatpush.bf16.msk.msrb.mxu0 %vm1605_vm2, %v1880_v13  ;;  %vm1639_vm8 = vmpackc.low %vm257_vm5, %vm253_vm4  ;;  %vm249_vm1 = vcmp.eq.s32.totalorder %v2138_v23, %v2278_v39  ;;  %vm309_vm2 = vcmp.eq.s32.totalorder %v2146_v24, %v2278_v39  ;;  %vm244_vm5 = vcmp.eq.s32.totalorder %v2135_v22, %v2297_v42 }
  0x62   : > { %1622 = vmatpush.bf16.msk.msrb.mxu1 %vm1621_vm3, %v1880_v13  ;;  %vm1655_vm13 = vmpackc.low %vm321_vm7, %vm317_vm6  ;;  %vm313_vm3 = vcmp.eq.s32.totalorder %v2149_v25, %v2278_v39  ;;  %vm248_vm6 = vcmp.eq.s32.totalorder %v2138_v23, %v2297_v42  ;;  %vm308_vm7 = vcmp.eq.s32.totalorder %v2146_v24, %v2297_v42  ;;  %v2533_v22 = vor.u32 %v1684_v20, %v1531_v19 }
  0x63   : > { %vm1607_vm14 = vmpackc.low %vm256_vm10, %vm252_vm9 }
  0x64   : > { %1640 = vmatpush.bf16.msk.msrb.mxu2 %vm1639_vm8, %v1880_v13  ;;  %vm1623_vm15 = vmpackc.low %vm320_vm12, %vm316_vm11  ;;  %vm312_vm8 = vcmp.eq.s32.totalorder %v2149_v25, %v2297_v42  ;;  %vm237_vm12 = vcmp.eq.s32.totalorder %v2173_v26, %v2278_v39 }
  0x65   : > { %775 = vmatmul.bf16.gmra.mxu0 %v2384_v49  ;;  %1656 = vmatpush.bf16.msk.msrb.mxu3 %vm1655_vm13, %v1880_v13  ;;  %vm1641_vm4 = vmpackc.low %vm249_vm1, %vm245_vm0  ;;  %vm241_vm13 = vcmp.eq.s32.totalorder %v2176_v27, %v2278_v39  ;;  %vm236_vm1 = vcmp.eq.s32.totalorder %v2173_v26, %v2297_v42 }
  0x66   : > { %824 = vmatmul.bf16.gmra.mxu1 %v2387_v50  ;;  %1608 = vmatpush.bf16.msk.msrb.mxu0 %vm1607_vm14, %v1880_v13  ;;  %vm1657_vm9 = vmpackc.low %vm313_vm3, %vm309_vm2  ;;  %vm301_vm14 = vcmp.eq.s32.totalorder %v2184_v28, %v2278_v39  ;;  %vm240_vm2 = vcmp.eq.s32.totalorder %v2176_v27, %v2297_v42  ;;  %vm300_vm3 = vcmp.eq.s32.totalorder %v2184_v28, %v2297_v42 }
  0x67   : > { %873 = vmatmul.bf16.gmra.mxu2 %v2384_v49  ;;  %1624 = vmatpush.bf16.msk.msrb.mxu1 %vm1623_vm15, %v1880_v13  ;;  %vm1609_vm10 = vmpackc.low %vm248_vm6, %vm244_vm5  ;;  %vm305_vm15 = vcmp.eq.s32.totalorder %v2187_v29, %v2278_v39 }
  0x68   : > { %922 = vmatmul.bf16.gmra.mxu3 %v2387_v50  ;;  %1642 = vmatpush.bf16.msk.msrb.mxu2 %vm1641_vm4, %v1880_v13  ;;  %vm1625_vm11 = vmpackc.low %vm312_vm8, %vm308_vm7  ;;  %vm304_vm4 = vcmp.eq.s32.totalorder %v2187_v29, %v2297_v42  ;;  %vm229_vm8 = vcmp.eq.s32.totalorder %v2211_v30, %v2278_v39 }
  0x69   : > { %1658 = vmatpush.bf16.msk.msrb.mxu3 %vm1657_vm9, %v1880_v13  ;;  %vm1643_vm0 = vmpackc.low %vm241_vm13, %vm237_vm12  ;;  %vm233_vm9 = vcmp.eq.s32.totalorder %v2214_v31, %v2278_v39  ;;  %vm228_vm13 = vcmp.eq.s32.totalorder %v2211_v30, %v2297_v42 }
  0x6a   : > { %1610 = vmatpush.bf16.msk.msrb.mxu0 %vm1609_vm10, %v1880_v13  ;;  %vm1659_vm5 = vmpackc.low %vm305_vm15, %vm301_vm14  ;;  %vm293_vm10 = vcmp.eq.s32.totalorder %v2222_v32, %v2278_v39  ;;  %vm232_vm14 = vcmp.eq.s32.totalorder %v2214_v31, %v2297_v42  ;;  %vm292_vm15 = vcmp.eq.s32.totalorder %v2222_v32, %v2297_v42 }
  0x6b   : > { %1626 = vmatpush.bf16.msk.msrb.mxu1 %vm1625_vm11, %v1880_v13  ;;  %vm1611_vm6 = vmpackc.low %vm240_vm2, %vm236_vm1  ;;  %vm297_vm11 = vcmp.eq.s32.totalorder %v2225_v33, %v2278_v39 }
  0x6c   : > { %1644 = vmatpush.bf16.msk.msrb.mxu2 %vm1643_vm0, %v1880_v13  ;;  %vm1627_vm7 = vmpackc.low %vm304_vm4, %vm300_vm3  ;;  %vm296_vm0 = vcmp.eq.s32.totalorder %v2225_v33, %v2297_v42  ;;  %vm221_vm4 = vcmp.eq.s32.totalorder %v2000_v1, %v2278_v39 }
  0x6d   : > { %1660 = vmatpush.bf16.msk.msrb.mxu3 %vm1659_vm5, %v1880_v13  ;;  %vm1645_vm12 = vmpackc.low %vm233_vm9, %vm229_vm8  ;;  %vm225_vm5 = vcmp.eq.s32.totalorder %v2249_v34, %v2278_v39  ;;  %vm220_vm9 = vcmp.eq.s32.totalorder %v2000_v1, %v2297_v42  ;;  %v1523_v1 = vld [vmem:[#allocation5 + $0x60] sm:$0xf] }
  0x6e   : > { %1612 = vmatpush.bf16.msk.msrb.mxu0 %vm1611_vm6, %v1880_v13  ;;  %vm1661_vm1 = vmpackc.low %vm297_vm11, %vm293_vm10  ;;  %vm285_vm6 = vcmp.eq.s32.totalorder %v2257_v35, %v2278_v39  ;;  %vm224_vm10 = vcmp.eq.s32.totalorder %v2249_v34, %v2297_v42  ;;  %vm284_vm11 = vcmp.eq.s32.totalorder %v2257_v35, %v2297_v42  ;;  %v2525_v17 = vor.u32 %v1682_v14, %v1523_v1 }
  0x6f   : > { %1628 = vmatpush.bf16.msk.msrb.mxu1 %vm1627_vm7, %v1880_v13  ;;  %vm1613_vm2 = vmpackc.low %vm232_vm14, %vm228_vm13  ;;  %vm289_vm7 = vcmp.eq.s32.totalorder %v2260_v36, %v2278_v39 }
  0x70   : > { %1646 = vmatpush.bf16.msk.msrb.mxu2 %vm1645_vm12, %v1880_v13  ;;  %vm1629_vm3 = vmpackc.low %vm296_vm0, %vm292_vm15  ;;  %vm288_vm12 = vcmp.eq.s32.totalorder %v2260_v36, %v2297_v42  ;;  %vm1231_vm0 = vcmask 1040384  }
  0x71   : > { %1662 = vmatpush.bf16.msk.msrb.mxu3 %vm1661_vm1, %v1880_v13  ;;  %vm1647_vm8 = vmpackc.low %vm225_vm5, %vm221_vm4  ;;  %vm1236_vm1 = vcmp.lt.s32.totalorder %v181_v0, 256 }
  0x72   : > { %1614 = vmatpush.bf16.msk.msrb.mxu0 %vm1613_vm2, %v1880_v13  ;;  %vm1663_vm13 = vmpackc.low %vm289_vm7, %vm285_vm6 }
  0x73   : > { %1630 = vmatpush.bf16.msk.msrb.mxu1 %vm1629_vm3, %v1880_v13  ;;  %vm1615_vm14 = vmpackc.low %vm224_vm10, %vm220_vm9 }
  0x74   : > { %1648 = vmatpush.bf16.msk.msrb.mxu2 %vm1647_vm8, %v1880_v13  ;;  %vm1631_vm15 = vmpackc.low %vm288_vm12, %vm284_vm11 }
  0x75   : > { %780 = vmatmul.bf16.gmra.mxu0 %v2413_v55  ;;  %1664 = vmatpush.bf16.msk.msrb.mxu3 %vm1663_vm13, %v1880_v13 }
  0x76   : > { %829 = vmatmul.bf16.gmra.mxu1 %v2415_v56  ;;  %1616 = vmatpush.bf16.msk.msrb.mxu0 %vm1615_vm14, %v1880_v13 }
  0x77   : > { %878 = vmatmul.bf16.gmra.mxu2 %v2413_v55  ;;  %1632 = vmatpush.bf16.msk.msrb.mxu1 %vm1631_vm15, %v1880_v13  ;;  %v1533_v13 = vld [vmem:[#allocation5 + $0x78] sm:$0xf0] }
  0x78   : > { %927 = vmatmul.bf16.gmra.mxu3 %v2415_v56  ;;  %v2535_v23 = vor.u32 %v1683_v21, %v1533_v13 }
  0x85   : > { %785 = vmatmul.bf16.gmra.mxu0 %v2441_v61 }
  0x86   : > { %834 = vmatmul.bf16.gmra.mxu1 %v2443_v62 }
  0x87   : > { %883 = vmatmul.bf16.gmra.mxu2 %v2441_v61 }
  0x88   : > { %932 = vmatmul.bf16.gmra.mxu3 %v2443_v62 }
  0x95   : > { %790 = vmatmul.bf16.gmra.mxu0 %v2469_v5 }
  0x96   : > { %839 = vmatmul.bf16.gmra.mxu1 %v2471_v6 }
  0x97   : > { %888 = vmatmul.bf16.gmra.mxu2 %v2469_v5 }
  0x98   : > { %937 = vmatmul.bf16.gmra.mxu3 %v2471_v6 }
  0xa5   : > { %795 = vmatmul.bf16.gmra.mxu0 %v2497_v11 }
  0xa6   : > { %844 = vmatmul.bf16.gmra.mxu1 %v2499_v12 }
  0xa7   : > { %893 = vmatmul.bf16.gmra.mxu2 %v2497_v11 }
  0xa8   : > { %942 = vmatmul.bf16.gmra.mxu3 %v2499_v12 }
  0xb5   : > { %800 = vmatmul.bf16.gmra.mxu0 %v2525_v17 }
  0xb6   : > { %849 = vmatmul.bf16.gmra.mxu1 %v2527_v18 }
  0xb7   : > { %898 = vmatmul.bf16.gmra.mxu2 %v2525_v17 }
  0xb8   : > { %947 = vmatmul.bf16.gmra.mxu3 %v2527_v18 }
  0xc5   : > { %805 = vmatmul.bf16.gmra.mxu0 %v2533_v22 }
  0xc6   : > { %854 = vmatmul.bf16.gmra.mxu1 %v2535_v23 }
  0xc7   : > { %903 = vmatmul.bf16.gmra.mxu2 %v2533_v22 }
  0xc8   : > { %952 = vmatmul.bf16.gmra.mxu3 %v2535_v23 }
  0xd2   : > { %v771_v24 = vpop.f32.mrf.mxu0 }
  0xd3   : > { %v820_v25 = vpop.f32.mrf.mxu1 }
  0xd4   : > { %v2541_v26 = vadd.f32 %v820_v25, %v771_v24 }
  0xd5   : > { %966 = vmatmul.bf16.vlgmr.msrb.gmra.mxu0 %v2310_v43 }
  0xd6   : > { %1015 = vmatmul.bf16.vlgmr.msrb.gmra.mxu1 %v2316_v44 }
  0xd7   : > { %1064 = vmatmul.bf16.vlgmr.msrb.gmra.mxu2 %v2310_v43 }
  0xd8   : > { %1113 = vmatmul.bf16.vlgmr.msrb.gmra.mxu3 %v2316_v44 }
  0xda   : > { %v869_v27 = vpop.f32.mrf.mxu2  ;;  %v773_v28 = vpop.f32.mrf.mxu0 }
  0xdb   : > { %v918_v29 = vpop.f32.mrf.mxu3  ;;  %v822_v30 = vpop.f32.mrf.mxu1 }
  0xdc   : > { %v2547_v31 = vadd.f32 %v918_v29, %v869_v27  ;;  %v2549_v32 = vadd.f32 %v822_v30, %v773_v28 }
  0xe2   : > { %v871_v33 = vpop.f32.mrf.mxu2  ;;  %v776_v34 = vpop.f32.mrf.mxu0 }
  0xe3   : > { %v920_v35 = vpop.f32.mrf.mxu3  ;;  %v825_v36 = vpop.f32.mrf.mxu1 }
  0xe4   : > { %v2551_v37 = vadd.f32 %v920_v35, %v871_v33  ;;  %v2553_v38 = vadd.f32 %v825_v36, %v776_v34 }
  0xe5   : > { %971 = vmatmul.bf16.gmra.mxu0 %v2384_v49 }
  0xe6   : > { %1020 = vmatmul.bf16.gmra.mxu1 %v2387_v50 }
  0xe7   : > { %1069 = vmatmul.bf16.gmra.mxu2 %v2384_v49 }
  0xe8   : > { %1118 = vmatmul.bf16.gmra.mxu3 %v2387_v50 }
  0xea   : > { %v874_v39 = vpop.f32.mrf.mxu2  ;;  %v778_v40 = vpop.f32.mrf.mxu0 }
  0xeb   : > { %v923_v41 = vpop.f32.mrf.mxu3  ;;  %v827_v42 = vpop.f32.mrf.mxu1 }
  0xec   : > { %v2559_v43 = vadd.f32 %v923_v41, %v874_v39  ;;  %v2561_v44 = vadd.f32 %v827_v42, %v778_v40 }
  0xf2   : > { %v876_v45 = vpop.f32.mrf.mxu2  ;;  %v781_v46 = vpop.f32.mrf.mxu0 }
  0xf3   : > { %v925_v47 = vpop.f32.mrf.mxu3  ;;  %v830_v48 = vpop.f32.mrf.mxu1 }
  0xf4   : > { %v2563_v51 = vadd.f32 %v925_v47, %v876_v45  ;;  %v2565_v52 = vadd.f32 %v830_v48, %v781_v46 }
  0xf5   : > { %976 = vmatmul.bf16.gmra.mxu0 %v2413_v55 }
  0xf6   : > { %1025 = vmatmul.bf16.gmra.mxu1 %v2415_v56 }
  0xf7   : > { %1074 = vmatmul.bf16.gmra.mxu2 %v2413_v55 }
  0xf8   : > { %1123 = vmatmul.bf16.gmra.mxu3 %v2415_v56 }
  0xfa   : > { %v879_v49 = vpop.f32.mrf.mxu2  ;;  %v783_v50 = vpop.f32.mrf.mxu0 }
  0xfb   : > { %v928_v53 = vpop.f32.mrf.mxu3  ;;  %v832_v54 = vpop.f32.mrf.mxu1 }
  0xfc   : > { %v2571_v57 = vadd.f32 %v928_v53, %v879_v49  ;;  %v2573_v58 = vadd.f32 %v832_v54, %v783_v50 }
 0x102   : > { %v881_v59 = vpop.f32.mrf.mxu2  ;;  %v786_v60 = vpop.f32.mrf.mxu0 }
 0x103   : > { %v930_v63 = vpop.f32.mrf.mxu3  ;;  %v835_v2 = vpop.f32.mrf.mxu1 }
 0x104   : > { %v2575_v3 = vadd.f32 %v930_v63, %v881_v59  ;;  %v2577_v4 = vadd.f32 %v835_v2, %v786_v60 }
 0x105   : > { %981 = vmatmul.bf16.gmra.mxu0 %v2441_v61 }
 0x106   : > { %1030 = vmatmul.bf16.gmra.mxu1 %v2443_v62 }
 0x107   : > { %1079 = vmatmul.bf16.gmra.mxu2 %v2441_v61 }
 0x108   : > { %1128 = vmatmul.bf16.gmra.mxu3 %v2443_v62 }
 0x10a   : > { %v884_v55 = vpop.f32.mrf.mxu2  ;;  %v788_v56 = vpop.f32.mrf.mxu0 }
 0x10b   : > { %v933_v7 = vpop.f32.mrf.mxu3  ;;  %v837_v8 = vpop.f32.mrf.mxu1 }
 0x10c   : > { %v2583_v9 = vadd.f32 %v933_v7, %v884_v55  ;;  %v2585_v10 = vadd.f32 %v837_v8, %v788_v56 }
 0x112   : > { %v886_v1 = vpop.f32.mrf.mxu2  ;;  %v791_v14 = vpop.f32.mrf.mxu0 }
 0x113   : > { %v935_v15 = vpop.f32.mrf.mxu3  ;;  %v840_v16 = vpop.f32.mrf.mxu1 }
 0x114   : > { %v2587_v19 = vadd.f32 %v935_v15, %v886_v1  ;;  %v2589_v20 = vadd.f32 %v840_v16, %v791_v14 }
 0x115   : > { %986 = vmatmul.bf16.gmra.mxu0 %v2469_v5 }
 0x116   : > { %1035 = vmatmul.bf16.gmra.mxu1 %v2471_v6 }
 0x117   : > { %1084 = vmatmul.bf16.gmra.mxu2 %v2469_v5 }
 0x118   : > { %1133 = vmatmul.bf16.gmra.mxu3 %v2471_v6 }
 0x11a   : > { %v889_v61 = vpop.f32.mrf.mxu2  ;;  %v793_v62 = vpop.f32.mrf.mxu0 }
 0x11b   : > { %v938_v21 = vpop.f32.mrf.mxu3  ;;  %v842_v13 = vpop.f32.mrf.mxu1 }
 0x11c   : > { %v2595_v24 = vadd.f32 %v938_v21, %v889_v61  ;;  %v2597_v25 = vadd.f32 %v842_v13, %v793_v62 }
 0x122   : > { %v891_v27 = vpop.f32.mrf.mxu2  ;;  %v796_v28 = vpop.f32.mrf.mxu0 }
 0x123   : > { %v940_v29 = vpop.f32.mrf.mxu3  ;;  %v845_v30 = vpop.f32.mrf.mxu1 }
 0x124   : > { %v2599_v33 = vadd.f32 %v940_v29, %v891_v27  ;;  %v2601_v34 = vadd.f32 %v845_v30, %v796_v28 }
 0x125   : > { %991 = vmatmul.bf16.gmra.mxu0 %v2497_v11 }
 0x126   : > { %1040 = vmatmul.bf16.gmra.mxu1 %v2499_v12 }
 0x127   : > { %1089 = vmatmul.bf16.gmra.mxu2 %v2497_v11 }
 0x128   : > { %1138 = vmatmul.bf16.gmra.mxu3 %v2499_v12 }
 0x12a   : > { %v894_v5 = vpop.f32.mrf.mxu2  ;;  %v798_v6 = vpop.f32.mrf.mxu0 }
 0x12b   : > { %v943_v35 = vpop.f32.mrf.mxu3  ;;  %v847_v36 = vpop.f32.mrf.mxu1 }
 0x12c   : > { %v2607_v39 = vadd.f32 %v943_v35, %v894_v5  ;;  %v2609_v40 = vadd.f32 %v847_v36, %v798_v6 }
 0x132   : > { %v896_v41 = vpop.f32.mrf.mxu2  ;;  %v801_v42 = vpop.f32.mrf.mxu0 }
 0x133   : > { %v945_v45 = vpop.f32.mrf.mxu3  ;;  %v850_v46 = vpop.f32.mrf.mxu1 }
 0x134   : > { %v2611_v47 = vadd.f32 %v945_v45, %v896_v41  ;;  %v2613_v48 = vadd.f32 %v850_v46, %v801_v42 }
 0x135   : > { %996 = vmatmul.bf16.gmra.mxu0 %v2525_v17 }
 0x136   : > { %1045 = vmatmul.bf16.gmra.mxu1 %v2527_v18 }
 0x137   : > { %1094 = vmatmul.bf16.gmra.mxu2 %v2525_v17 }
 0x138   : > { %1143 = vmatmul.bf16.gmra.mxu3 %v2527_v18 }
 0x13a   : > { %v899_v11 = vpop.f32.mrf.mxu2  ;;  %v803_v12 = vpop.f32.mrf.mxu0 }
 0x13b   : > { %v948_v49 = vpop.f32.mrf.mxu3  ;;  %v852_v50 = vpop.f32.mrf.mxu1 }
 0x13c   : > { %v2619_v53 = vadd.f32 %v948_v49, %v899_v11  ;;  %v2621_v54 = vadd.f32 %v852_v50, %v803_v12 }
 0x142   : > { %v901_v59 = vpop.f32.mrf.mxu2  ;;  %v806_v60 = vpop.f32.mrf.mxu0 }
 0x143   : > { %v950_v63 = vpop.f32.mrf.mxu3  ;;  %v855_v2 = vpop.f32.mrf.mxu1 }
 0x144   : > { %v2623_v55 = vadd.f32 %v950_v63, %v901_v59  ;;  %v2625_v56 = vadd.f32 %v855_v2, %v806_v60 }
 0x145   : > { %1001 = vmatmul.bf16.gmra.mxu0 %v2533_v22 }
 0x146   : > { %1050 = vmatmul.bf16.gmra.mxu1 %v2535_v23 }
 0x147   : > { %1099 = vmatmul.bf16.gmra.mxu2 %v2533_v22 }
 0x148   : > { %1148 = vmatmul.bf16.gmra.mxu3 %v2535_v23 }
 0x14a   : > { %v904_v17 = vpop.f32.mrf.mxu2  ;;  %v808_v18 = vpop.f32.mrf.mxu0 }
 0x14b   : > { %v953_v7 = vpop.f32.mrf.mxu3  ;;  %v857_v8 = vpop.f32.mrf.mxu1 }
 0x14c   : > { %v2631_v1 = vadd.f32 %v953_v7, %v904_v17  ;;  %v2633_v14 = vadd.f32 %v857_v8, %v808_v18 }
 0x152   : > { %v906_v15 = vpop.f32.mrf.mxu2  ;;  %v967_v16 = vpop.f32.mrf.mxu0 }
 0x153   : > { %v955_v61 = vpop.f32.mrf.mxu3  ;;  %v1016_v62 = vpop.f32.mrf.mxu1 }
 0x154   : > { %v2635_v21 = vadd.f32 %v955_v61, %v906_v15  ;;  %v1017_v13 = vadd.f32 %v1016_v62, %v967_v16 }
 0x156   : > { %v1154_v27 = vmul.f32 %v1017_v13, %v2541_v26 }
 0x15a   : > { %v1065_v22 = vpop.f32.mrf.mxu2  ;;  %v969_v28 = vpop.f32.mrf.mxu0 }
 0x15b   : > { %v1114_v23 = vpop.f32.mrf.mxu3  ;;  %v1018_v29 = vpop.f32.mrf.mxu1 }
 0x15c   : > { %v1115_v30 = vadd.f32 %v1114_v23, %v1065_v22  ;;  %v1019_v5 = vadd.f32 %v1018_v29, %v969_v28 }
 0x15e   : > { %v1155_v6 = vmul.f32 %v1115_v30, %v2547_v31  ;;  %v1156_v35 = vmul.f32 %v1019_v5, %v2549_v32 }
 0x160   : > { %v1186_v36 = vadd.f32 %v1156_v35, %v1154_v27 }
 0x162   : > { %v1067_v41 = vpop.f32.mrf.mxu2  ;;  %v972_v42 = vpop.f32.mrf.mxu0 }
 0x163   : > { %v1116_v45 = vpop.f32.mrf.mxu3  ;;  %v1021_v46 = vpop.f32.mrf.mxu1 }
 0x164   : > { %v1117_v11 = vadd.f32 %v1116_v45, %v1067_v41  ;;  %v1022_v12 = vadd.f32 %v1021_v46, %v972_v42 }
 0x166   : > { %v1157_v49 = vmul.f32 %v1117_v11, %v2551_v37  ;;  %v1158_v26 = vmul.f32 %v1022_v12, %v2553_v38 }
 0x168   : > { %v1207_v50 = vadd.f32 %v1157_v49, %v1155_v6  ;;  %v1187_v59 = vadd.f32 %v1186_v36, %v1158_v26 }
 0x16a   : > { %v1070_v60 = vpop.f32.mrf.mxu2  ;;  %v974_v63 = vpop.f32.mrf.mxu0 }
 0x16b   : > { %v1119_v2 = vpop.f32.mrf.mxu3  ;;  %v1023_v17 = vpop.f32.mrf.mxu1 }
 0x16c   : > { %v1120_v31 = vadd.f32 %v1119_v2, %v1070_v60  ;;  %v1024_v18 = vadd.f32 %v1023_v17, %v974_v63 }
 0x16e   : > { %v1159_v32 = vmul.f32 %v1120_v31, %v2559_v43  ;;  %v1160_v7 = vmul.f32 %v1024_v18, %v2561_v44 }
 0x170   : > { %v1208_v8 = vadd.f32 %v1207_v50, %v1159_v32  ;;  %v1188_v15 = vadd.f32 %v1187_v59, %v1160_v7 }
 0x172   : > { %v1072_v16 = vpop.f32.mrf.mxu2  ;;  %v977_v61 = vpop.f32.mrf.mxu0 }
 0x173   : > { %v1121_v62 = vpop.f32.mrf.mxu3  ;;  %v1026_v37 = vpop.f32.mrf.mxu1 }
 0x174   : > { %v1122_v13 = vadd.f32 %v1121_v62, %v1072_v16  ;;  %v1027_v38 = vadd.f32 %v1026_v37, %v977_v61 }
 0x176   : > { %v1161_v27 = vmul.f32 %v1122_v13, %v2563_v51  ;;  %v1162_v22 = vmul.f32 %v1027_v38, %v2565_v52 }
 0x178   : > { %v1209_v28 = vadd.f32 %v1208_v8, %v1161_v27  ;;  %v1189_v23 = vadd.f32 %v1188_v15, %v1162_v22 }
 0x17a   : > { %v1075_v29 = vpop.f32.mrf.mxu2  ;;  %v979_v30 = vpop.f32.mrf.mxu0 }
 0x17b   : > { %v1124_v5 = vpop.f32.mrf.mxu3  ;;  %v1028_v43 = vpop.f32.mrf.mxu1 }
 0x17c   : > { %v1125_v6 = vadd.f32 %v1124_v5, %v1075_v29  ;;  %v1029_v44 = vadd.f32 %v1028_v43, %v979_v30 }
 0x17e   : > { %v1163_v35 = vmul.f32 %v1125_v6, %v2571_v57  ;;  %v1164_v36 = vmul.f32 %v1029_v44, %v2573_v58 }
 0x180   : > { %v1210_v41 = vadd.f32 %v1209_v28, %v1163_v35  ;;  %v1190_v42 = vadd.f32 %v1189_v23, %v1164_v36 }
 0x182   : > { %v1077_v45 = vpop.f32.mrf.mxu2  ;;  %v982_v46 = vpop.f32.mrf.mxu0 }
 0x183   : > { %v1126_v11 = vpop.f32.mrf.mxu3  ;;  %v1031_v51 = vpop.f32.mrf.mxu1 }
 0x184   : > { %v1127_v12 = vadd.f32 %v1126_v11, %v1077_v45  ;;  %v1032_v52 = vadd.f32 %v1031_v51, %v982_v46 }
 0x186   : > { %v1165_v49 = vmul.f32 %v1127_v12, %v2575_v3  ;;  %v1166_v26 = vmul.f32 %v1032_v52, %v2577_v4 }
 0x188   : > { %v1211_v50 = vadd.f32 %v1210_v41, %v1165_v49  ;;  %v1191_v59 = vadd.f32 %v1190_v42, %v1166_v26 }
 0x18a   : > { %v1080_v60 = vpop.f32.mrf.mxu2  ;;  %v984_v63 = vpop.f32.mrf.mxu0 }
 0x18b   : > { %v1129_v2 = vpop.f32.mrf.mxu3  ;;  %v1033_v57 = vpop.f32.mrf.mxu1 }
 0x18c   : > { %v1130_v17 = vadd.f32 %v1129_v2, %v1080_v60  ;;  %v1034_v58 = vadd.f32 %v1033_v57, %v984_v63 }
 0x18e   : > { %v1167_v31 = vmul.f32 %v1130_v17, %v2583_v9  ;;  %v1168_v18 = vmul.f32 %v1034_v58, %v2585_v10 }
 0x190   : > { %v1212_v32 = vadd.f32 %v1211_v50, %v1167_v31  ;;  %v1192_v7 = vadd.f32 %v1191_v59, %v1168_v18 }
 0x192   : > { %v1082_v8 = vpop.f32.mrf.mxu2  ;;  %v987_v15 = vpop.f32.mrf.mxu0 }
 0x193   : > { %v1131_v16 = vpop.f32.mrf.mxu3  ;;  %v1036_v3 = vpop.f32.mrf.mxu1 }
 0x194   : > { %v1132_v61 = vadd.f32 %v1131_v16, %v1082_v8  ;;  %v1037_v4 = vadd.f32 %v1036_v3, %v987_v15 }
 0x196   : > { %v1169_v62 = vmul.f32 %v1132_v61, %v2587_v19  ;;  %v1170_v37 = vmul.f32 %v1037_v4, %v2589_v20 }
 0x198   : > { %v1213_v13 = vadd.f32 %v1212_v32, %v1169_v62  ;;  %v1193_v38 = vadd.f32 %v1192_v7, %v1170_v37 }
 0x19a   : > { %v1085_v27 = vpop.f32.mrf.mxu2  ;;  %v989_v22 = vpop.f32.mrf.mxu0 }
 0x19b   : > { %v1134_v28 = vpop.f32.mrf.mxu3  ;;  %v1038_v9 = vpop.f32.mrf.mxu1 }
 0x19c   : > { %v1135_v23 = vadd.f32 %v1134_v28, %v1085_v27  ;;  %v1039_v10 = vadd.f32 %v1038_v9, %v989_v22 }
 0x19e   : > { %v1171_v29 = vmul.f32 %v1135_v23, %v2595_v24  ;;  %v1172_v30 = vmul.f32 %v1039_v10, %v2597_v25 }
 0x1a0   : > { %v1214_v5 = vadd.f32 %v1213_v13, %v1171_v29  ;;  %v1194_v43 = vadd.f32 %v1193_v38, %v1172_v30 }
 0x1a2   : > { %v1087_v6 = vpop.f32.mrf.mxu2  ;;  %v992_v44 = vpop.f32.mrf.mxu0 }
 0x1a3   : > { %v1136_v35 = vpop.f32.mrf.mxu3  ;;  %v1041_v19 = vpop.f32.mrf.mxu1 }
 0x1a4   : > { %v1137_v36 = vadd.f32 %v1136_v35, %v1087_v6  ;;  %v1042_v20 = vadd.f32 %v1041_v19, %v992_v44 }
 0x1a6   : > { %v1173_v41 = vmul.f32 %v1137_v36, %v2599_v33  ;;  %v1174_v42 = vmul.f32 %v1042_v20, %v2601_v34 }
 0x1a8   : > { %v1215_v45 = vadd.f32 %v1214_v5, %v1173_v41  ;;  %v1195_v46 = vadd.f32 %v1194_v43, %v1174_v42 }
 0x1aa   : > { %v1090_v11 = vpop.f32.mrf.mxu2  ;;  %v994_v51 = vpop.f32.mrf.mxu0 }
 0x1ab   : > { %v1139_v12 = vpop.f32.mrf.mxu3  ;;  %v1043_v24 = vpop.f32.mrf.mxu1 }
 0x1ac   : > { %v1140_v52 = vadd.f32 %v1139_v12, %v1090_v11  ;;  %v1044_v25 = vadd.f32 %v1043_v24, %v994_v51 }
 0x1ae   : > { %v1175_v49 = vmul.f32 %v1140_v52, %v2607_v39  ;;  %v1176_v26 = vmul.f32 %v1044_v25, %v2609_v40 }
 0x1b0   : > { %v1216_v50 = vadd.f32 %v1215_v45, %v1175_v49  ;;  %v1196_v59 = vadd.f32 %v1195_v46, %v1176_v26 }
 0x1b2   : > { %v1092_v60 = vpop.f32.mrf.mxu2  ;;  %v997_v63 = vpop.f32.mrf.mxu0 }
 0x1b3   : > { %v1141_v2 = vpop.f32.mrf.mxu3  ;;  %v1046_v33 = vpop.f32.mrf.mxu1 }
 0x1b4   : > { %v1142_v57 = vadd.f32 %v1141_v2, %v1092_v60  ;;  %v1047_v34 = vadd.f32 %v1046_v33, %v997_v63 }
 0x1b6   : > { %v1177_v17 = vmul.f32 %v1142_v57, %v2611_v47  ;;  %v1178_v58 = vmul.f32 %v1047_v34, %v2613_v48 }
 0x1b8   : > { %v1217_v31 = vadd.f32 %v1216_v50, %v1177_v17  ;;  %v1197_v18 = vadd.f32 %v1196_v59, %v1178_v58 }
 0x1ba   : > { %v1095_v32 = vpop.f32.mrf.mxu2  ;;  %v999_v7 = vpop.f32.mrf.mxu0 }
 0x1bb   : > { %v1144_v8 = vpop.f32.mrf.mxu3  ;;  %v1048_v39 = vpop.f32.mrf.mxu1 }
 0x1bc   : > { %v1145_v15 = vadd.f32 %v1144_v8, %v1095_v32  ;;  %v1049_v40 = vadd.f32 %v1048_v39, %v999_v7 }
 0x1be   : > { %v1179_v16 = vmul.f32 %v1145_v15, %v2619_v53  ;;  %v1180_v3 = vmul.f32 %v1049_v40, %v2621_v54 }
 0x1c0   : > { %v1218_v61 = vadd.f32 %v1217_v31, %v1179_v16  ;;  %v1198_v4 = vadd.f32 %v1197_v18, %v1180_v3 }
 0x1c2   : > { %v1097_v62 = vpop.f32.mrf.mxu2  ;;  %v1002_v37 = vpop.f32.mrf.mxu0 }
 0x1c3   : > { %v1146_v13 = vpop.f32.mrf.mxu3  ;;  %v1051_v47 = vpop.f32.mrf.mxu1 }
 0x1c4   : > { %v1147_v38 = vadd.f32 %v1146_v13, %v1097_v62  ;;  %v1052_v48 = vadd.f32 %v1051_v47, %v1002_v37 }
 0x1c6   : > { %v1181_v27 = vmul.f32 %v1147_v38, %v2623_v55  ;;  %v1182_v22 = vmul.f32 %v1052_v48, %v2625_v56 }
 0x1c8   : > { %v1219_v28 = vadd.f32 %v1218_v61, %v1181_v27  ;;  %v1199_v9 = vadd.f32 %v1198_v4, %v1182_v22 }
 0x1ca   : > { %v1100_v23 = vpop.f32.mrf.mxu2  ;;  %v1004_v10 = vpop.f32.mrf.mxu0 }
 0x1cb   : > { %v1149_v29 = vpop.f32.mrf.mxu3  ;;  %v1053_v53 = vpop.f32.mrf.mxu1 }
 0x1cc   : > { %v1150_v30 = vadd.f32 %v1149_v29, %v1100_v23  ;;  %v1054_v54 = vadd.f32 %v1053_v53, %v1004_v10 }
 0x1ce   : > { %v1183_v5 = vmul.f32 %v1150_v30, %v2631_v1  ;;  %v1184_v43 = vmul.f32 %v1054_v54, %v2633_v14 }
 0x1d0   : > { %v1220_v6 = vadd.f32 %v1219_v28, %v1183_v5  ;;  %v1200_v44 = vadd.f32 %v1199_v9, %v1184_v43 }
 0x1d2   : > { %v1201_v35 = vrot.slane %v1200_v44, 4  ;;  %v1102_v55 = vpop.f32.mrf.mxu2 }
 0x1d3   : > { %v1151_v19 = vpop.f32.mrf.mxu3 }
 0x1d4   : > { %v1152_v56 = vadd.f32 %v1151_v19, %v1102_v55  ;;  %v1202_v36 = vadd.f32 %v1201_v35, %v1200_v44 }
 0x1d6   : > { %v1185_v20 = vmul.f32 %v1152_v56, %v2635_v21  ;;  %v1203_v42 = vrot.slane %v1202_v36, 2 }
 0x1d8   : > { %v1221_v41 = vadd.f32 %v1220_v6, %v1185_v20  ;;  %v1204_v11 = vadd.f32 %v1203_v42, %v1202_v36 }
 0x1da   : > { %v1222_v45 = vrot.slane %v1221_v41, 4  ;;  %v1205_v14 = vrot.slane %v1204_v11, 1 }
 0x1dc   : > { %v1223_v46 = vadd.f32 %v1222_v45, %v1221_v41  ;;  %v1206_v21 = vadd.f32 %v1205_v14, %v1204_v11 }
 0x1de   : > { %v1224_v51 = vrot.slane %v1223_v46, 2 }
 0x1e0   : > { %v1225_v1 = vadd.f32 %v1224_v51, %v1223_v46 }
 0x1e2   : > { %v1226_v12 = vrot.slane %v1225_v1, 1 }
 0x1e4   : > { %v1227_v24 = vadd.f32 %v1226_v12, %v1225_v1 }
 0x1e6   : > { %v1230_v52 = vrot.slane %v1227_v24, 7 }
 0x1e8   : > { %v1232_v25 = vsel %vm1231_vm0, %v1206_v21, %v1230_v52 }
 0x1e9   : > { %1238 = vst.msk [vmem:[%s177_s14] sm:$0x3] %vm1236_vm1, %v1232_v25 }
 0x1ea   : > { %1832 = shalt.err (!%p1829_p9)
}
 0x1eb   : > { %1691 = dma.vmem_to_hbm [thread:$0]  (%p1956_p13), %s1253_s15, 32, %s1255_s18, %s1240_s16  }
 0x1ec PF: > { %s1266_s29 = sand.u32 1, %s1863_s9   ;;  %p2712_p10 = scmp.ge.s32.totalorder %s1875_s12, 2 }
 0x1ed   : > { %s1267_s4 = scalar_lea.sflag [#allocation4], %s1266_s29 }
 0x1ee   : > { %p1702_p11 = pnand %p2712_p10, %p1961_p4 }
 0x1f0   : > { %p1703_p0 = pneg %p1702_p11 }
 0x1f2   : > { %1858 = dma.done.wait (%p1703_p0), %s1267_s4, 32  }
 0x1f3   : > { %1860 = vsyncadd (%p1703_p0), %s1267_s4, 4294967264  ;;  %p16_p2 = scmp.ge.s32.totalorder %s1936_s23, 4   ;;  %s2713_s9 = smov %s1867_s10 }
 0x1f4   : > { %s2714_s10 = smov %s1871_s11  ;;  %s2715_s11 = smov %s1948_s26 }
 0x1f5   : > { %s2716_s12 = smov %s1936_s23  ;;  %18 = sbr.rel (!%p16_p2) target bundleno = 6 (0x6), region = 77 }
 0x1fa   :  { %1273 = vsyncpa [#allocation3], 1 }
 0x1fb   :  { %1275 = vsyncpa [#allocation3 + $0x1], 1 }
 0x1fc   :  { %1276 = vsyncpa [#allocation6], 1 }
 0x1fd   :  { %1277 = vsyncpa [#allocation4], 1 }
 0x1fe   :  { %1279 = vsyncpa [#allocation4 + $0x1], 1 }

</bundles_post_ra>
